<compile_context>
chip_gen: v5e
topology: v5e:2x2
jax: 0.10.0
libtpu: 0.0.40
codegen_flags: <defaults>
</compile_context>

<pallas_src>
import functools
import math

import jax
import jax.numpy as jnp
from jax import lax
from jax.experimental import pallas as pl
from jax.experimental.pallas import tpu as pltpu


# ----------------------------- Pallas kernels ------------------------------

def _layer_norm(x, w, b, eps=1e-5):
    mu = jnp.mean(x, axis=-1, keepdims=True)
    var = jnp.mean((x - mu) ** 2, axis=-1, keepdims=True)
    return (x - mu) * lax.rsqrt(var + eps) * w + b


def make_encoder_layer_kernel(d_model, n_head):
    dh = d_model // n_head
    scale = 1.0 / math.sqrt(dh)

    def kernel(x_ref, pad_ref,
               in_w_ref, in_b_ref, out_w_ref, out_b_ref,
               ln1_w_ref, ln1_b_ref,
               ff1_w_ref, ff1_b_ref, ff2_w_ref, ff2_b_ref,
               ln2_w_ref, ln2_b_ref, o_ref):
        S = x_ref.shape[1]
        x = x_ref[0].astype(jnp.float32)          # (S, D) residual stream, f32
        x_bf = x.astype(jnp.bfloat16)

        # ---- additive attention bias, built in-kernel (no HBM (S,S) DMA) ----
        row = lax.broadcasted_iota(jnp.int32, (S, S), 0)
        col = lax.broadcasted_iota(jnp.int32, (S, S), 1)
        bias = jnp.where(col > row, jnp.float32(-1e9), jnp.float32(0.0))
        bias = bias + pad_ref[0]                  # (S,S) + (1,S) key-pad bias

        # ---- self-attention: fused QKV, heads batched in one contraction ----
        qkv = jnp.dot(x_bf, in_w_ref[...],
                      preferred_element_type=jnp.float32) + in_b_ref[...]
        q = qkv[:, :d_model].reshape(S, n_head, dh).astype(jnp.bfloat16)
        k = qkv[:, d_model:2 * d_model].reshape(S, n_head, dh).astype(jnp.bfloat16)
        v = qkv[:, 2 * d_model:].reshape(S, n_head, dh).astype(jnp.bfloat16)

        sc = jnp.einsum('qhd,khd->hqk', q, k,
                        preferred_element_type=jnp.float32) * scale
        sc = sc + bias[None]                              # (H, S, S)
        sc = sc - jnp.max(sc, axis=-1, keepdims=True)
        p = jnp.exp(sc)
        p = p * pl.reciprocal(jnp.sum(p, axis=-1, keepdims=True), approx=True)

        ctx = jnp.einsum('hqk,khd->qhd', p.astype(jnp.bfloat16), v,
                         preferred_element_type=jnp.float32)   # (S, H, dh)
        attn = ctx.reshape(S, d_model)

        attn = jnp.dot(attn.astype(jnp.bfloat16), out_w_ref[...],
                       preferred_element_type=jnp.float32) + out_b_ref[...]

        # ---- residual + LayerNorm 1 (post-norm, PyTorch default) ----
        x1 = _layer_norm(x + attn, ln1_w_ref[...], ln1_b_ref[...])

        # ---- feed-forward: linear -> relu -> linear ----
        h1 = jnp.dot(x1.astype(jnp.bfloat16), ff1_w_ref[...],
                     preferred_element_type=jnp.float32) + ff1_b_ref[...]
        h1 = jnp.maximum(h1, 0.0)
        h2 = jnp.dot(h1.astype(jnp.bfloat16), ff2_w_ref[...],
                     preferred_element_type=jnp.float32) + ff2_b_ref[...]

        # ---- residual + LayerNorm 2 ----
        x2 = _layer_norm(x1 + h2, ln2_w_ref[...], ln2_b_ref[...])
        o_ref[0] = x2.astype(o_ref.dtype)

    return kernel


def encoder_layer(x, pad_bias, p, d_model, n_head):
    # TODO(synk): for production S/D, block this over the sequence axis with a
    # flash-style KV inner loop so the resident set stays under v7x's 64 MiB.
    B, S, D = x.shape
    kernel = make_encoder_layer_kernel(d_model, n_head)

    weights = [p["in_w"], p["in_b"], p["out_w"], p["out_b"],
               p["ln1_w"], p["ln1_b"],
               p["ff1_w"], p["ff1_b"], p["ff2_w"], p["ff2_b"],
               p["ln2_w"], p["ln2_b"]]

    def whole(arr):
        nd = arr.ndim
        return pl.BlockSpec(arr.shape, lambda b, _nd=nd: (0,) * _nd)

    x_spec = pl.BlockSpec((1, S, D), lambda b: (b, 0, 0))
    pad_spec = pl.BlockSpec((1, 1, S), lambda b: (b, 0, 0))

    return pl.pallas_call(
        kernel,
        out_shape=jax.ShapeDtypeStruct(x.shape, x.dtype),
        grid=(B,),
        in_specs=[x_spec, pad_spec] + [whole(w) for w in weights],
        out_specs=x_spec,
        compiler_params=pltpu.CompilerParams(
            dimension_semantics=("parallel",)),
    )(x, pad_bias, *weights)


def proj_kernel(x_ref, w_ref, o_ref, acc_ref):
    @pl.when(pl.program_id(2) == 0)
    def _():
        acc_ref[...] = jnp.zeros_like(acc_ref)

    acc_ref[...] += jnp.dot(x_ref[...], w_ref[...],
                            preferred_element_type=jnp.float32)

    @pl.when(pl.program_id(2) == pl.num_programs(2) - 1)
    def _():
        o_ref[...] = acc_ref[...].astype(o_ref.dtype)


def project_to_vocab(x2d_bf16, emb_t_bf16, tm=256, tn=256, tk=512):
    """logits = x @ emb.T, tiled matmul with f32 accumulation."""
    M, D = x2d_bf16.shape
    V = emb_t_bf16.shape[1]
    # Fall back to full extents when the (toy) dims don't divide the tiles.
    tm = tm if M % tm == 0 else M
    tn = tn if V % tn == 0 else V
    tk = tk if D % tk == 0 else D
    return pl.pallas_call(
        proj_kernel,
        out_shape=jax.ShapeDtypeStruct((M, V), jnp.float32),
        grid=(M // tm, V // tn, D // tk),
        in_specs=[pl.BlockSpec((tm, tk), lambda i, j, k: (i, k)),
                  pl.BlockSpec((tk, tn), lambda i, j, k: (k, j))],
        out_specs=pl.BlockSpec((tm, tn), lambda i, j, k: (i, j)),
        scratch_shapes=[pltpu.VMEM((tm, tn), jnp.float32)],
        compiler_params=pltpu.CompilerParams(
            dimension_semantics=("parallel", "parallel", "arbitrary")),
    )(x2d_bf16, emb_t_bf16)


# ------------------------------- JAX glue -----------------------------------

def positional_encoding(seq_len, d_model):
    position = jnp.arange(seq_len, dtype=jnp.float32)[:, None]
    div_term = jnp.exp(jnp.arange(0, d_model, 2, dtype=jnp.float32)
                       * -(math.log(10000.0) / d_model))
    pe = jnp.zeros((seq_len, d_model), jnp.float32)
    pe = pe.at[:, 0::2].set(jnp.sin(position * div_term))
    pe = pe.at[:, 1::2].set(jnp.cos(position * div_term))
    return pe


def init_params(key, d_model, dim_ff, layer_num, vocab_size, padding_idx):
    keys = jax.random.split(key, 1 + layer_num)
    emb = jax.random.normal(keys[0], (vocab_size, d_model), jnp.float32) * 0.02
    emb = emb.at[padding_idx].set(0.0)          # padding_idx row is zero
    layers = []
    for l in range(layer_num):
        ks = jax.random.split(keys[1 + l], 4)
        layers.append(dict(
            # matmul weights stored contract-dim-first and in bf16 (MXU feed)
            in_w=(jax.random.normal(ks[0], (d_model, 3 * d_model), jnp.float32)
                  * 0.02).astype(jnp.bfloat16),
            in_b=jnp.zeros((1, 3 * d_model), jnp.float32),
            out_w=(jax.random.normal(ks[1], (d_model, d_model), jnp.float32)
                   * 0.02).astype(jnp.bfloat16),
            out_b=jnp.zeros((1, d_model), jnp.float32),
            ln1_w=jnp.ones((1, d_model), jnp.float32),
            ln1_b=jnp.zeros((1, d_model), jnp.float32),
            ff1_w=(jax.random.normal(ks[2], (d_model, dim_ff), jnp.float32)
                   * 0.02).astype(jnp.bfloat16),
            ff1_b=jnp.zeros((1, dim_ff), jnp.float32),
            ff2_w=(jax.random.normal(ks[3], (dim_ff, d_model), jnp.float32)
                   * 0.02).astype(jnp.bfloat16),
            ff2_b=jnp.zeros((1, d_model), jnp.float32),
            ln2_w=jnp.ones((1, d_model), jnp.float32),
            ln2_b=jnp.zeros((1, d_model), jnp.float32),
        ))
    return emb, layers


def gpt_forward(batch_seq, src_mask, pe, emb, layers, *, d_model, n_head):
    B, S = batch_seq.shape
    # embedding lookup + positional encoding (glue; dropout is identity in eval)
    x = jnp.take(emb, batch_seq, axis=0)                 # (B, S, D) f32
    x = x + pe[None, :S]

    # key-padding additive bias only: (B, 1, S); causal part is built in-kernel
    pad_bias = jnp.where(src_mask, jnp.float32(-1e9),
                         jnp.float32(0.0))[:, None, :]

    for p in layers:
        x = encoder_layer(x, pad_bias, p, d_model, n_head)

    # tied output projection: logits = x @ emb.T  (bf16 operands, f32 acc)
    emb_t = jnp.transpose(emb).astype(jnp.bfloat16)      # (D, V)
    x2d = x.reshape(B * S, d_model).astype(jnp.bfloat16)
    logits = project_to_vocab(x2d, emb_t)
    return logits.reshape(B, S, -1)


# --------------------------------- main --------------------------------------

if __name__ == "__main__":
    d_model = 32
    n_head = 4
    dim_feedforward = 64
    layer_num = 2
    padding_idx = 0
    vocab_size = 64
    batch, seq = 2, 8
    # TODO(synk): d_model=32 / vocab=64 give sub-128-lane stores; at production
    # sizes pick lane-dense (>=128, 256 on v6e/v7x) output tiles.

    key = jax.random.PRNGKey(0)
    k_par, k_tok = jax.random.split(key)

    emb, layers = init_params(k_par, d_model, dim_feedforward,
                              layer_num, vocab_size, padding_idx)
    pe = positional_encoding(seq, d_model)               # precomputed once

    batch_seq = jax.random.randint(k_tok, (batch, seq), 1, vocab_size,
                                   dtype=jnp.int32)
    batch_seq = batch_seq.at[1, -2:].set(padding_idx)    # pad tail of 2nd seq
    src_mask = (batch_seq == padding_idx)                # (B, S) bool, True=pad

    fwd = jax.jit(functools.partial(gpt_forward, d_model=d_model,
                                    n_head=n_head))
    logits = fwd(batch_seq, src_mask, pe, emb, layers)
    logits = jax.block_until_ready(logits)

    assert logits.shape == (batch, seq, vocab_size)
    assert bool(jnp.all(jnp.isfinite(logits)))
    print("KERNEL_OK")
</pallas_src>

<mosaic_0001>
module attributes {stable_mosaic.version = 11 : i64} {
  func.func @proj_kernel(%arg0: i32, %arg1: i32, %arg2: i32, %arg3: memref<16x32xbf16, #tpu.memory_space<vmem>>, %arg4: memref<32x64xbf16, #tpu.memory_space<vmem>>, %arg5: memref<16x64xf32, #tpu.memory_space<vmem>>, %arg6: memref<16x64xf32, #tpu.memory_space<vmem>>) attributes {dimension_semantics = [#tpu.dimension_semantics<parallel>, #tpu.dimension_semantics<parallel>, #tpu.dimension_semantics<arbitrary>], iteration_bounds = array<i64: 1, 1, 1>, scalar_prefetch = 0 : i64, scratch_operands = 1 : i64, tpu.core_type = #tpu.core_type<tc>, window_params = [{transform_indices = @transform_0, window_bounds = array<i64: 16, 32>}, {transform_indices = @transform_1, window_bounds = array<i64: 32, 64>}, {transform_indices = @transform_2, window_bounds = array<i64: 16, 64>}]} {
    %c0_i32 = arith.constant 0 : i32
    %0 = arith.cmpi eq, %arg2, %c0_i32 : i32
    %1 = arith.extui %0 : i1 to i32
    %c0_i32_0 = arith.constant 0 : i32
    %2 = arith.cmpi ne, %1, %c0_i32_0 : i32
    scf.if %2 {
      %cst_10 = arith.constant 0.000000e+00 : f32
      %12 = vector.broadcast %cst_10 : f32 to vector<16x64xf32>
      %c0_11 = arith.constant 0 : index
      %c0_12 = arith.constant 0 : index
      %13 = vector.load %arg6[%c0_11, %c0_12] : memref<16x64xf32, #tpu.memory_space<vmem>>, vector<16x64xf32>
      tpu.vector_store %arg6[%c0_11, %c0_12], %12 {strides = array<i32>} : memref<16x64xf32, #tpu.memory_space<vmem>>, vector<16x64xf32>,
    } else {
    }
    %c0 = arith.constant 0 : index
    %c0_1 = arith.constant 0 : index
    %3 = vector.load %arg6[%c0, %c0_1] : memref<16x64xf32, #tpu.memory_space<vmem>>, vector<16x64xf32>
    %c0_2 = arith.constant 0 : index
    %c0_3 = arith.constant 0 : index
    %4 = vector.load %arg3[%c0_2, %c0_3] : memref<16x32xbf16, #tpu.memory_space<vmem>>, vector<16x32xbf16>
    %c0_4 = arith.constant 0 : index
    %c0_5 = arith.constant 0 : index
    %5 = vector.load %arg4[%c0_4, %c0_5] : memref<32x64xbf16, #tpu.memory_space<vmem>>, vector<32x64xbf16>
    %cst = arith.constant dense<0.000000e+00> : vector<16x64xf32>
    %6 = tpu.matmul %4, %5, %cst {dimension_numbers = #tpu.dot_dimension_numbers<[1], [0], [0], [1], [0, 0, 1, 1], [], []>} : vector<16x32xbf16>, vector<32x64xbf16>, vector<16x64xf32> -> vector<16x64xf32>
    %7 = arith.addf %3, %6 : vector<16x64xf32>
    %c0_6 = arith.constant 0 : index
    %c0_7 = arith.constant 0 : index
    %8 = vector.load %arg6[%c0_6, %c0_7] : memref<16x64xf32, #tpu.memory_space<vmem>>, vector<16x64xf32>
    tpu.vector_store %arg6[%c0_6, %c0_7], %7 {strides = array<i32>} : memref<16x64xf32, #tpu.memory_space<vmem>>, vector<16x64xf32>,
    %c0_i32_8 = arith.constant 0 : i32
    %9 = arith.cmpi eq, %arg2, %c0_i32_8 : i32
    %10 = arith.extui %9 : i1 to i32
    %c0_i32_9 = arith.constant 0 : i32
    %11 = arith.cmpi ne, %10, %c0_i32_9 : i32
    scf.if %11 {
      %c0_10 = arith.constant 0 : index
      %c0_11 = arith.constant 0 : index
      %12 = vector.load %arg6[%c0_10, %c0_11] : memref<16x64xf32, #tpu.memory_space<vmem>>, vector<16x64xf32>
      %c0_12 = arith.constant 0 : index
      %c0_13 = arith.constant 0 : index
      %13 = vector.load %arg5[%c0_12, %c0_13] : memref<16x64xf32, #tpu.memory_space<vmem>>, vector<16x64xf32>
      tpu.vector_store %arg5[%c0_12, %c0_13], %12 {strides = array<i32>} : memref<16x64xf32, #tpu.memory_space<vmem>>, vector<16x64xf32>,
    } else {
    }
    return
  }
  func.func @transform_0(%arg0: i32, %arg1: i32, %arg2: i32) -> (i32, i32) {
    %c0_i32 = arith.constant 0 : i32
    return %arg0, %arg2 : i32, i32
  }
  func.func @transform_1(%arg0: i32, %arg1: i32, %arg2: i32) -> (i32, i32) {
    %c0_i32 = arith.constant 0 : i32
    return %arg2, %arg1 : i32, i32
  }
  func.func @transform_2(%arg0: i32, %arg1: i32, %arg2: i32) -> (i32, i32) {
    %c0_i32 = arith.constant 0 : i32
    return %arg0, %arg1 : i32, i32
  }
}

module attributes {stable_mosaic.version = 11 : i64} {
  func.func @kernel(%arg0: i32, %arg1: memref<1x8x32xf32, #tpu.memory_space<vmem>>, %arg2: memref<1x1x8xf32, #tpu.memory_space<vmem>>, %arg3: memref<32x96xbf16, #tpu.memory_space<vmem>>, %arg4: memref<1x96xf32, #tpu.memory_space<vmem>>, %arg5: memref<32x32xbf16, #tpu.memory_space<vmem>>, %arg6: memref<1x32xf32, #tpu.memory_space<vmem>>, %arg7: memref<1x32xf32, #tpu.memory_space<vmem>>, %arg8: memref<1x32xf32, #tpu.memory_space<vmem>>, %arg9: memref<32x64xbf16, #tpu.memory_space<vmem>>, %arg10: memref<1x64xf32, #tpu.memory_space<vmem>>, %arg11: memref<64x32xbf16, #tpu.memory_space<vmem>>, %arg12: memref<1x32xf32, #tpu.memory_space<vmem>>, %arg13: memref<1x32xf32, #tpu.memory_space<vmem>>, %arg14: memref<1x32xf32, #tpu.memory_space<vmem>>, %arg15: memref<1x8x32xf32, #tpu.memory_space<vmem>>) attributes {dimension_semantics = [#tpu.dimension_semantics<parallel>], iteration_bounds = array<i64: 2>, scalar_prefetch = 0 : i64, scratch_operands = 0 : i64, tpu.core_type = #tpu.core_type<tc>, window_params = [{transform_indices = @transform_0, window_bounds = array<i64: 1, 8, 32>}, {transform_indices = @transform_1, window_bounds = array<i64: 1, 1, 8>}, {pipeline_mode = #tpu.pipeline_mode<synchronous>, transform_indices = @transform_2, window_bounds = array<i64: 32, 96>}, {pipeline_mode = #tpu.pipeline_mode<synchronous>, transform_indices = @transform_3, window_bounds = array<i64: 1, 96>}, {pipeline_mode = #tpu.pipeline_mode<synchronous>, transform_indices = @transform_4, window_bounds = array<i64: 32, 32>}, {pipeline_mode = #tpu.pipeline_mode<synchronous>, transform_indices = @transform_5, window_bounds = array<i64: 1, 32>}, {pipeline_mode = #tpu.pipeline_mode<synchronous>, transform_indices = @transform_6, window_bounds = array<i64: 1, 32>}, {pipeline_mode = #tpu.pipeline_mode<synchronous>, transform_indices = @transform_7, window_bounds = array<i64: 1, 32>}, {pipeline_mode = #tpu.pipeline_mode<synchronous>, transform_indices = @transform_8, window_bounds = array<i64: 32, 64>}, {pipeline_mode = #tpu.pipeline_mode<synchronous>, transform_indices = @transform_9, window_bounds = array<i64: 1, 64>}, {pipeline_mode = #tpu.pipeline_mode<synchronous>, transform_indices = @transform_10, window_bounds = array<i64: 64, 32>}, {pipeline_mode = #tpu.pipeline_mode<synchronous>, transform_indices = @transform_11, window_bounds = array<i64: 1, 32>}, {pipeline_mode = #tpu.pipeline_mode<synchronous>, transform_indices = @transform_12, window_bounds = array<i64: 1, 32>}, {pipeline_mode = #tpu.pipeline_mode<synchronous>, transform_indices = @transform_13, window_bounds = array<i64: 1, 32>}, {transform_indices = @transform_14, window_bounds = array<i64: 1, 8, 32>}]} {
    %c0 = arith.constant 0 : index
    %c0_0 = arith.constant 0 : index
    %c0_1 = arith.constant 0 : index
    %0 = vector.load %arg1[%c0, %c0_0, %c0_1] : memref<1x8x32xf32, #tpu.memory_space<vmem>>, vector<1x8x32xf32>
    %1 = vector.shape_cast %0 : vector<1x8x32xf32> to vector<8x32xf32>
    %2 = arith.truncf %1 : vector<8x32xf32> to vector<8x32xbf16>
    %3 = tpu.iota {dimensions = array<i32: 0>} : vector<8x8xi32>
    %4 = tpu.iota {dimensions = array<i32: 1>} : vector<8x8xi32>
    %5 = arith.cmpi sgt, %4, %3 : vector<8x8xi32>
    %cst = arith.constant -1.000000e+09 : f32
    %cst_2 = arith.constant 0.000000e+00 : f32
    %6 = vector.broadcast %cst : f32 to vector<8x8xf32>
    %7 = vector.broadcast %cst_2 : f32 to vector<8x8xf32>
    %8 = arith.select %5, %6, %7 : vector<8x8xi1>, vector<8x8xf32>
    %c0_3 = arith.constant 0 : index
    %c0_4 = arith.constant 0 : index
    %c0_5 = arith.constant 0 : index
    %9 = vector.load %arg2[%c0_3, %c0_4, %c0_5] : memref<1x1x8xf32, #tpu.memory_space<vmem>>, vector<1x1x8xf32>
    %10 = vector.shape_cast %9 : vector<1x1x8xf32> to vector<1x8xf32>
    %11 = vector.broadcast %10 : vector<1x8xf32> to vector<8x8xf32>
    %12 = arith.addf %8, %11 : vector<8x8xf32>
    %c0_6 = arith.constant 0 : index
    %c0_7 = arith.constant 0 : index
    %13 = vector.load %arg3[%c0_6, %c0_7] : memref<32x96xbf16, #tpu.memory_space<vmem>>, vector<32x96xbf16>
    %cst_8 = arith.constant dense<0.000000e+00> : vector<8x96xf32>
    %14 = tpu.matmul %2, %13, %cst_8 {dimension_numbers = #tpu.dot_dimension_numbers<[1], [0], [0], [1], [0, 0, 1, 1], [], []>} : vector<8x32xbf16>, vector<32x96xbf16>, vector<8x96xf32> -> vector<8x96xf32>
    %c0_9 = arith.constant 0 : index
    %c0_10 = arith.constant 0 : index
    %15 = vector.load %arg4[%c0_9, %c0_10] : memref<1x96xf32, #tpu.memory_space<vmem>>, vector<1x96xf32>
    %16 = vector.broadcast %15 : vector<1x96xf32> to vector<8x96xf32>
    %17 = arith.addf %14, %16 : vector<8x96xf32>
    %18 = vector.extract_strided_slice %17 {offsets = [0, 0], sizes = [8, 32], strides = [1, 1]} : vector<8x96xf32> to vector<8x32xf32>
    %19 = vector.shape_cast %18 : vector<8x32xf32> to vector<8x4x8xf32>
    %20 = arith.truncf %19 : vector<8x4x8xf32> to vector<8x4x8xbf16>
    %21 = vector.extract_strided_slice %17 {offsets = [0, 32], sizes = [8, 32], strides = [1, 1]} : vector<8x96xf32> to vector<8x32xf32>
    %22 = vector.shape_cast %21 : vector<8x32xf32> to vector<8x4x8xf32>
    %23 = arith.truncf %22 : vector<8x4x8xf32> to vector<8x4x8xbf16>
    %24 = vector.extract_strided_slice %17 {offsets = [0, 64], sizes = [8, 32], strides = [1, 1]} : vector<8x96xf32> to vector<8x32xf32>
    %25 = vector.shape_cast %24 : vector<8x32xf32> to vector<8x4x8xf32>
    %26 = arith.truncf %25 : vector<8x4x8xf32> to vector<8x4x8xbf16>
    "tpu.trace_start"() <{level = 10 : i32, message = "qhd,khd->hqk"}> : () -> ()
    %cst_11 = arith.constant dense<0.000000e+00> : vector<4x8x8xf32>
    %27 = tpu.matmul %20, %23, %cst_11 {dimension_numbers = #tpu.dot_dimension_numbers<[2], [2], [0], [0], [0, 1, 0, 0, 1, 0], [1], [1]>} : vector<8x4x8xbf16>, vector<8x4x8xbf16>, vector<4x8x8xf32> -> vector<4x8x8xf32>
    "tpu.trace_stop"() : () -> ()
    %cst_12 = arith.constant 0.353553385 : f32
    %28 = vector.broadcast %cst_12 : f32 to vector<4x8x8xf32>
    %29 = arith.mulf %27, %28 : vector<4x8x8xf32>
    %30 = vector.shape_cast %12 : vector<8x8xf32> to vector<1x8x8xf32>
    %31 = vector.broadcast %30 : vector<1x8x8xf32> to vector<4x8x8xf32>
    %32 = arith.addf %29, %31 : vector<4x8x8xf32>
    %cst_13 = arith.constant dense<0xFF800000> : vector<4x8xf32>
    %33 = vector.multi_reduction <maximumf>, %32, %cst_13 [2] : vector<4x8x8xf32> to vector<4x8xf32>
    %34 = vector.shape_cast %33 : vector<4x8xf32> to vector<4x8x1xf32>
    %35 = vector.broadcast %34 : vector<4x8x1xf32> to vector<4x8x8xf32>
    %36 = arith.subf %32, %35 : vector<4x8x8xf32>
    %37 = math.exp %36 : vector<4x8x8xf32>
    %cst_14 = arith.constant dense<0.000000e+00> : vector<4x8xf32>
    %38 = vector.multi_reduction <add>, %37, %cst_14 [2] : vector<4x8x8xf32> to vector<4x8xf32>
    %39 = vector.shape_cast %38 : vector<4x8xf32> to vector<4x8x1xf32>
    %40 = tpu.reciprocal %39 {approx = true} : vector<4x8x1xf32> -> vector<4x8x1xf32>
    %41 = vector.broadcast %40 : vector<4x8x1xf32> to vector<4x8x8xf32>
    %42 = arith.mulf %37, %41 : vector<4x8x8xf32>
    %43 = arith.truncf %42 : vector<4x8x8xf32> to vector<4x8x8xbf16>
    "tpu.trace_start"() <{level = 10 : i32, message = "hqk,khd->qhd"}> : () -> ()
    %cst_15 = arith.constant dense<0.000000e+00> : vector<4x8x8xf32>
    %44 = tpu.matmul %26, %43, %cst_15 {dimension_numbers = #tpu.dot_dimension_numbers<[0], [2], [2], [1], [0, 1, 0, 2, 1, 1], [1], [0]>} : vector<8x4x8xbf16>, vector<4x8x8xbf16>, vector<4x8x8xf32> -> vector<4x8x8xf32>
    %45 = tpu.transpose %44, [2, 0, 1] : vector<4x8x8xf32> -> vector<8x4x8xf32>
    "tpu.trace_stop"() : () -> ()
    %46 = vector.shape_cast %45 : vector<8x4x8xf32> to vector<8x32xf32>
    %47 = arith.truncf %46 : vector<8x32xf32> to vector<8x32xbf16>
    %c0_16 = arith.constant 0 : index
    %c0_17 = arith.constant 0 : index
    %48 = vector.load %arg5[%c0_16, %c0_17] : memref<32x32xbf16, #tpu.memory_space<vmem>>, vector<32x32xbf16>
    %cst_18 = arith.constant dense<0.000000e+00> : vector<8x32xf32>
    %49 = tpu.matmul %47, %48, %cst_18 {dimension_numbers = #tpu.dot_dimension_numbers<[1], [0], [0], [1], [0, 0, 1, 1], [], []>} : vector<8x32xbf16>, vector<32x32xbf16>, vector<8x32xf32> -> vector<8x32xf32>
    %c0_19 = arith.constant 0 : index
    %c0_20 = arith.constant 0 : index
    %50 = vector.load %arg6[%c0_19, %c0_20] : memref<1x32xf32, #tpu.memory_space<vmem>>, vector<1x32xf32>
    %51 = vector.broadcast %50 : vector<1x32xf32> to vector<8x32xf32>
    %52 = arith.addf %49, %51 : vector<8x32xf32>
    %53 = arith.addf %1, %52 : vector<8x32xf32>
    %c0_21 = arith.constant 0 : index
    %c0_22 = arith.constant 0 : index
    %54 = vector.load %arg7[%c0_21, %c0_22] : memref<1x32xf32, #tpu.memory_space<vmem>>, vector<1x32xf32>
    %c0_23 = arith.constant 0 : index
    %c0_24 = arith.constant 0 : index
    %55 = vector.load %arg8[%c0_23, %c0_24] : memref<1x32xf32, #tpu.memory_space<vmem>>, vector<1x32xf32>
    %cst_25 = arith.constant dense<0.000000e+00> : vector<8xf32>
    %56 = vector.multi_reduction <add>, %53, %cst_25 [1] : vector<8x32xf32> to vector<8xf32>
    %57 = vector.shape_cast %56 : vector<8xf32> to vector<8x1xf32>
    %cst_26 = arith.constant 3.200000e+01 : f32
    %58 = vector.broadcast %cst_26 : f32 to vector<8x1xf32>
    %59 = arith.divf %57, %58 : vector<8x1xf32>
    %60 = vector.broadcast %59 : vector<8x1xf32> to vector<8x32xf32>
    %61 = arith.subf %53, %60 : vector<8x32xf32>
    %62 = arith.mulf %61, %61 : vector<8x32xf32>
    %cst_27 = arith.constant dense<0.000000e+00> : vector<8xf32>
    %63 = vector.multi_reduction <add>, %62, %cst_27 [1] : vector<8x32xf32> to vector<8xf32>
    %64 = vector.shape_cast %63 : vector<8xf32> to vector<8x1xf32>
    %cst_28 = arith.constant 3.200000e+01 : f32
    %65 = vector.broadcast %cst_28 : f32 to vector<8x1xf32>
    %66 = arith.divf %64, %65 : vector<8x1xf32>
    %67 = vector.broadcast %59 : vector<8x1xf32> to vector<8x32xf32>
    %68 = arith.subf %53, %67 : vector<8x32xf32>
    %cst_29 = arith.constant 9.99999974E-6 : f32
    %69 = vector.broadcast %cst_29 : f32 to vector<8x1xf32>
    %70 = arith.addf %66, %69 : vector<8x1xf32>
    %71 = math.rsqrt %70 : vector<8x1xf32>
    %72 = vector.broadcast %71 : vector<8x1xf32> to vector<8x32xf32>
    %73 = arith.mulf %68, %72 : vector<8x32xf32>
    %74 = vector.broadcast %54 : vector<1x32xf32> to vector<8x32xf32>
    %75 = arith.mulf %73, %74 : vector<8x32xf32>
    %76 = vector.broadcast %55 : vector<1x32xf32> to vector<8x32xf32>
    %77 = arith.addf %75, %76 : vector<8x32xf32>
    %78 = arith.truncf %77 : vector<8x32xf32> to vector<8x32xbf16>
    %c0_30 = arith.constant 0 : index
    %c0_31 = arith.constant 0 : index
    %79 = vector.load %arg9[%c0_30, %c0_31] : memref<32x64xbf16, #tpu.memory_space<vmem>>, vector<32x64xbf16>
    %cst_32 = arith.constant dense<0.000000e+00> : vector<8x64xf32>
    %80 = tpu.matmul %78, %79, %cst_32 {dimension_numbers = #tpu.dot_dimension_numbers<[1], [0], [0], [1], [0, 0, 1, 1], [], []>} : vector<8x32xbf16>, vector<32x64xbf16>, vector<8x64xf32> -> vector<8x64xf32>
    %c0_33 = arith.constant 0 : index
    %c0_34 = arith.constant 0 : index
    %81 = vector.load %arg10[%c0_33, %c0_34] : memref<1x64xf32, #tpu.memory_space<vmem>>, vector<1x64xf32>
    %82 = vector.broadcast %81 : vector<1x64xf32> to vector<8x64xf32>
    %83 = arith.addf %80, %82 : vector<8x64xf32>
    %cst_35 = arith.constant 0.000000e+00 : f32
    %84 = vector.broadcast %cst_35 : f32 to vector<8x64xf32>
    %85 = arith.maximumf %83, %84 : vector<8x64xf32>
    %86 = arith.truncf %85 : vector<8x64xf32> to vector<8x64xbf16>
    %c0_36 = arith.constant 0 : index
    %c0_37 = arith.constant 0 : index
    %87 = vector.load %arg11[%c0_36, %c0_37] : memref<64x32xbf16, #tpu.memory_space<vmem>>, vector<64x32xbf16>
    %cst_38 = arith.constant dense<0.000000e+00> : vector<8x32xf32>
    %88 = tpu.matmul %86, %87, %cst_38 {dimension_numbers = #tpu.dot_dimension_numbers<[1], [0], [0], [1], [0, 0, 1, 1], [], []>} : vector<8x64xbf16>, vector<64x32xbf16>, vector<8x32xf32> -> vector<8x32xf32>
    %c0_39 = arith.constant 0 : index
    %c0_40 = arith.constant 0 : index
    %89 = vector.load %arg12[%c0_39, %c0_40] : memref<1x32xf32, #tpu.memory_space<vmem>>, vector<1x32xf32>
    %90 = vector.broadcast %89 : vector<1x32xf32> to vector<8x32xf32>
    %91 = arith.addf %88, %90 : vector<8x32xf32>
    %92 = arith.addf %77, %91 : vector<8x32xf32>
    %c0_41 = arith.constant 0 : index
    %c0_42 = arith.constant 0 : index
    %93 = vector.load %arg13[%c0_41, %c0_42] : memref<1x32xf32, #tpu.memory_space<vmem>>, vector<1x32xf32>
    %c0_43 = arith.constant 0 : index
    %c0_44 = arith.constant 0 : index
    %94 = vector.load %arg14[%c0_43, %c0_44] : memref<1x32xf32, #tpu.memory_space<vmem>>, vector<1x32xf32>
    %cst_45 = arith.constant dense<0.000000e+00> : vector<8xf32>
    %95 = vector.multi_reduction <add>, %92, %cst_45 [1] : vector<8x32xf32> to vector<8xf32>
    %96 = vector.shape_cast %95 : vector<8xf32> to vector<8x1xf32>
    %cst_46 = arith.constant 3.200000e+01 : f32
    %97 = vector.broadcast %cst_46 : f32 to vector<8x1xf32>
    %98 = arith.divf %96, %97 : vector<8x1xf32>
    %99 = vector.broadcast %98 : vector<8x1xf32> to vector<8x32xf32>
    %100 = arith.subf %92, %99 : vector<8x32xf32>
    %101 = arith.mulf %100, %100 : vector<8x32xf32>
    %cst_47 = arith.constant dense<0.000000e+00> : vector<8xf32>
    %102 = vector.multi_reduction <add>, %101, %cst_47 [1] : vector<8x32xf32> to vector<8xf32>
    %103 = vector.shape_cast %102 : vector<8xf32> to vector<8x1xf32>
    %cst_48 = arith.constant 3.200000e+01 : f32
    %104 = vector.broadcast %cst_48 : f32 to vector<8x1xf32>
    %105 = arith.divf %103, %104 : vector<8x1xf32>
    %106 = vector.broadcast %98 : vector<8x1xf32> to vector<8x32xf32>
    %107 = arith.subf %92, %106 : vector<8x32xf32>
    %cst_49 = arith.constant 9.99999974E-6 : f32
    %108 = vector.broadcast %cst_49 : f32 to vector<8x1xf32>
    %109 = arith.addf %105, %108 : vector<8x1xf32>
    %110 = math.rsqrt %109 : vector<8x1xf32>
    %111 = vector.broadcast %110 : vector<8x1xf32> to vector<8x32xf32>
    %112 = arith.mulf %107, %111 : vector<8x32xf32>
    %113 = vector.broadcast %93 : vector<1x32xf32> to vector<8x32xf32>
    %114 = arith.mulf %112, %113 : vector<8x32xf32>
    %115 = vector.broadcast %94 : vector<1x32xf32> to vector<8x32xf32>
    %116 = arith.addf %114, %115 : vector<8x32xf32>
    %c0_50 = arith.constant 0 : index
    %c0_51 = arith.constant 0 : index
    %c0_52 = arith.constant 0 : index
    %117 = vector.load %arg15[%c0_50, %c0_51, %c0_52] : memref<1x8x32xf32, #tpu.memory_space<vmem>>, vector<1x8x32xf32>
    %118 = vector.shape_cast %117 : vector<1x8x32xf32> to vector<8x32xf32>
    %119 = vector.shape_cast %116 : vector<8x32xf32> to vector<1x8x32xf32>
    tpu.vector_store %arg15[%c0_50, %c0_51, %c0_52], %119 {strides = array<i32>} : memref<1x8x32xf32, #tpu.memory_space<vmem>>, vector<1x8x32xf32>,
    return
  }
  func.func @transform_0(%arg0: i32) -> (i32, i32, i32) {
    %c0_i32 = arith.constant 0 : i32
    %c0_i32_0 = arith.constant 0 : i32
    %c0_i32_1 = arith.constant 0 : i32
    return %arg0, %c0_i32, %c0_i32_0 : i32, i32, i32
  }
  func.func @transform_1(%arg0: i32) -> (i32, i32, i32) {
    %c0_i32 = arith.constant 0 : i32
    %c0_i32_0 = arith.constant 0 : i32
    %c0_i32_1 = arith.constant 0 : i32
    return %arg0, %c0_i32, %c0_i32_0 : i32, i32, i32
  }
  func.func @transform_2(%arg0: i32) -> (i32, i32) {
    %c0_i32 = arith.constant 0 : i32
    %c0_i32_0 = arith.constant 0 : i32
    %c0_i32_1 = arith.constant 0 : i32
    return %c0_i32, %c0_i32_0 : i32, i32
  }
  func.func @transform_3(%arg0: i32) -> (i32, i32) {
    %c0_i32 = arith.constant 0 : i32
    %c0_i32_0 = arith.constant 0 : i32
    %c0_i32_1 = arith.constant 0 : i32
    return %c0_i32, %c0_i32_0 : i32, i32
  }
  func.func @transform_4(%arg0: i32) -> (i32, i32) {
    %c0_i32 = arith.constant 0 : i32
    %c0_i32_0 = arith.constant 0 : i32
    %c0_i32_1 = arith.constant 0 : i32
    return %c0_i32, %c0_i32_0 : i32, i32
  }
  func.func @transform_5(%arg0: i32) -> (i32, i32) {
    %c0_i32 = arith.constant 0 : i32
    %c0_i32_0 = arith.constant 0 : i32
    %c0_i32_1 = arith.constant 0 : i32
    return %c0_i32, %c0_i32_0 : i32, i32
  }
  func.func @transform_6(%arg0: i32) -> (i32, i32) {
    %c0_i32 = arith.constant 0 : i32
    %c0_i32_0 = arith.constant 0 : i32
    %c0_i32_1 = arith.constant 0 : i32
    return %c0_i32, %c0_i32_0 : i32, i32
  }
  func.func @transform_7(%arg0: i32) -> (i32, i32) {
    %c0_i32 = arith.constant 0 : i32
    %c0_i32_0 = arith.constant 0 : i32
    %c0_i32_1 = arith.constant 0 : i32
    return %c0_i32, %c0_i32_0 : i32, i32
  }
  func.func @transform_8(%arg0: i32) -> (i32, i32) {
    %c0_i32 = arith.constant 0 : i32
    %c0_i32_0 = arith.constant 0 : i32
    %c0_i32_1 = arith.constant 0 : i32
    return %c0_i32, %c0_i32_0 : i32, i32
  }
  func.func @transform_9(%arg0: i32) -> (i32, i32) {
    %c0_i32 = arith.constant 0 : i32
    %c0_i32_0 = arith.constant 0 : i32
    %c0_i32_1 = arith.constant 0 : i32
    return %c0_i32, %c0_i32_0 : i32, i32
  }
  func.func @transform_10(%arg0: i32) -> (i32, i32) {
    %c0_i32 = arith.constant 0 : i32
    %c0_i32_0 = arith.constant 0 : i32
    %c0_i32_1 = arith.constant 0 : i32
    return %c0_i32, %c0_i32_0 : i32, i32
  }
  func.func @transform_11(%arg0: i32) -> (i32, i32) {
    %c0_i32 = arith.constant 0 : i32
    %c0_i32_0 = arith.constant 0 : i32
    %c0_i32_1 = arith.constant 0 : i32
    return %c0_i32, %c0_i32_0 : i32, i32
  }
  func.func @transform_12(%arg0: i32) -> (i32, i32) {
    %c0_i32 = arith.constant 0 : i32
    %c0_i32_0 = arith.constant 0 : i32
    %c0_i32_1 = arith.constant 0 : i32
    return %c0_i32, %c0_i32_0 : i32, i32
  }
  func.func @transform_13(%arg0: i32) -> (i32, i32) {
    %c0_i32 = arith.constant 0 : i32
    %c0_i32_0 = arith.constant 0 : i32
    %c0_i32_1 = arith.constant 0 : i32
    return %c0_i32, %c0_i32_0 : i32, i32
  }
  func.func @transform_14(%arg0: i32) -> (i32, i32, i32) {
    %c0_i32 = arith.constant 0 : i32
    %c0_i32_0 = arith.constant 0 : i32
    %c0_i32_1 = arith.constant 0 : i32
    return %arg0, %c0_i32, %c0_i32_0 : i32, i32, i32
  }
}

</mosaic_0001>

<bundles_post_ra>
// kernel: gpt_forward.5
= control target key start
LH: loop header
LB: loop body
LE: loop exit
PB: predicated region body
PF: predicated region fallthrough
CT: control target
= control target key end

     0   :  { %vm17_vm0 = vcmask 523264   ;;  %v139_v1 = vmov 0.0   ;;  %s176_s0 = inlined_call_operand.vmem [shape: bf16[16,32], index: 0, kind: input, shape index: {}]   ;;  %s177_s1 = inlined_call_operand.vmem [shape: bf16[32,64], index: 1, kind: input, shape index: {}]   ;;  %s178_s2 = inlined_call_operand.hbm [shape: f32[16,64], index: 2, kind: output, shape index: {}]  }
   0x1   :  { %v108_v0 = vld [vmem:[%s177_s1 + $0x8] sm:$0xff]  ;;  %18 = vst.msk [vmem:[#allocation2] sm:$0xff] %vm17_vm0, %v139_v1 }
   0x2   :  { %7 = vsyncpa [#allocation4], 0  ;;  %55 = vmatpush.bf16.msra.mxu0 %v108_v0  ;;  %v107_v2 = vld [vmem:[%s177_s1] sm:$0xff]  ;;  %19 = vst.msk [vmem:[#allocation2 + $0x8] sm:$0xff] %vm17_vm0, %v139_v1  ;;  %vm45_vm1 = vcmask 261120   ;;  %s140_s1 = smov [#allocation3]  }
   0x3   :  { %v106_v3 = vld [vmem:[%s176_s0] sm:$0xff]  ;;  %s79_s15 = sshll.u32 %s140_s1, 4  ;;  %s81_s17 = sshll.u32 %s178_s2, 4  ;;  %s80_s15 = int_to_ptr.vmem [resolvable:$true] %s79_s15  ;;  %s82_s17 = int_to_ptr.hbm [resolvable:$true] %s81_s17 }
   0x4   :  { %s141_s18 = smov 128   ;;  %s142_s19 = smov 8  }
   0x6   :  { %56 = vmatpush.bf16.msra.mxu0 %v107_v2 }
   0x8   :  { %v20_v4 = vld [vmem:[#allocation2] sm:$0xff] }
   0x9   :  { %105 = vmatmul.msk.bf16.vlgmr.msra.gmra.mxu0 %vm45_vm1, %v106_v3  ;;  %v21_v7 = vld [vmem:[#allocation2 + $0x8] sm:$0xff] }
  0x86   :  { %v58_v5 = vpop.f32.mrf.mxu0 }
  0x87   :  { %v63_v6 = vadd.f32 %v58_v5, %v20_v4 }
  0x89   :  { %66 = vst.msk [vmem:[#allocation2] sm:$0xff] %vm17_vm0, %v63_v6 }
  0x8e   :  { %v60_v8 = vpop.f32.mrf.mxu0 }
  0x8f   :  { %v64_v9 = vadd.f32 %v60_v8, %v21_v7 }
  0x90   :  { %v71_v10 = vld [vmem:[#allocation2] sm:$0xff] }
  0x91   :  { %67 = vst.msk [vmem:[#allocation2 + $0x8] sm:$0xff] %vm17_vm0, %v64_v9 }
  0x92   :  { %73 = vst.msk [vmem:[#allocation3] sm:$0xff] %vm17_vm0, %v71_v10 }
  0x98   :  { %v72_v11 = vld [vmem:[#allocation2 + $0x8] sm:$0xff] }
  0x99   :  { %74 = vst.msk [vmem:[#allocation3 + $0x8] sm:$0xff] %vm17_vm0, %v72_v11 }
  0x9a   :  { %87 = dma.vmem_to_hbm [thread:$0]  %s80_s15, 256, %s82_s17, [#allocation4], %s141_s18, %s141_s18, %s142_s19  }
  0x9b   :  { %137 = dma.done.wait [#allocation4], 256  }
  0x9c   :  { %138 = vsyncadd [#allocation4], 4294967040 }
  0x9d   :  { %92 = vsyncpa [#allocation4], 1 }

// kernel: gpt_forward.3
= control target key start
LH: loop header
LB: loop body
LE: loop exit
PB: predicated region body
PF: predicated region fallthrough
CT: control target
= control target key end

     0   :  { %s2631_s29 = smov 0   ;;  %s3002_s0 = inlined_call_operand.vmem [shape: f32[2,8,32], index: 0, kind: input, shape index: {}]   ;;  %s3003_s1 = inlined_call_operand.vmem [shape: f32[2,1,8], index: 1, kind: input, shape index: {}]   ;;  %s3004_s2 = inlined_call_operand.vmem [shape: bf16[32,96], index: 2, kind: input, shape index: {}]   ;;  %s3005_s3 = inlined_call_operand.vmem [shape: f32[1,96], index: 3, kind: input, shape index: {}]   ;;  %s3006_s4 = inlined_call_operand.vmem [shape: bf16[32,32], index: 4, kind: input, shape index: {}]   ;;  %s3007_s5 = inlined_call_operand.vmem [shape: f32[1,32], index: 5, kind: input, shape index: {}]   ;;  %s3008_s6 = inlined_call_operand.vmem [shape: f32[1,32], index: 6, kind: input, shape index: {}]   ;;  %s3009_s7 = inlined_call_operand.vmem [shape: f32[1,32], index: 7, kind: input, shape index: {}]   ;;  %s3010_s8 = inlined_call_operand.vmem [shape: bf16[32,64], index: 8, kind: input, shape index: {}]   ;;  %s3011_s9 = inlined_call_operand.vmem [shape: f32[1,64], index: 9, kind: input, shape index: {}]   ;;  %s3012_s10 = inlined_call_operand.vmem [shape: bf16[64,32], index: 10, kind: input, shape index: {}]   ;;  %s3013_s11 = inlined_call_operand.vmem [shape: f32[1,32], index: 11, kind: input, shape index: {}]   ;;  %s3014_s12 = inlined_call_operand.vmem [shape: f32[1,32], index: 12, kind: input, shape index: {}]   ;;  %s3015_s13 = inlined_call_operand.vmem [shape: f32[1,32], index: 13, kind: input, shape index: {}]   ;;  %s3016_s14 = inlined_call_operand.vmem [shape: f32[2,8,32], index: 14, kind: output, shape index: {}]  }
   0x1 LB: > { %s2330_s30 = sadd.s32 4294967295, %s2542_s29   ;;  %p2334_p0 = scmp.ge.s32.totalorder %s2542_s29, 1  ;;  %s2542_s29 = sphi %s2631_s29, %s24_s29  }
   0x2   : > { %p419_p1 = scmp.lt.s32.totalorder %s2542_s29, 3 }
   0x4   : > { %p420_p2 = pnand %p2334_p0, %p419_p1 }
   0x5   : > { %p466_p3 = scmp.lt.s32.totalorder (!%p420_p2), %s2330_s30, 1  ;;  %s2544_s28 = smov (!%p420_p2), 112  }
   0x6   : > { %423 = sbr.rel (%p420_p2) target bundleno = 2903 (0xb57), region = 76  ;;  %s2545_s15 = smov (!%p420_p2), 120  }
   0x7   : > { %s2546_s16 = smov (!%p420_p2), 104   ;;  %s2547_s17 = smov (!%p420_p2), 96  }
   0x8   : > { %s2550_s18 = smov (!%p420_p2), 64   ;;  %s2553_s23 = smov (!%p420_p2), 16  }
   0x9   : > { %s2554_s24 = smov (!%p420_p2), 8  }
   0xb   : > { %v2392_v0 = vld [vmem:[%s3004_s2 + $0x8] sm:$0xff]  ;;  %v2391_v1 = vld [vmem:[%s3004_s2] sm:$0xff]  ;;  %s3018_s30 = smov (!%p466_p3, %s2330_s30), 1  ;;  %vm511_vm0 = vcmask 261120   ;;  %v2548_v16 = vmov 1983009808  }
   0xc   : > { %521 = vmatpush.bf16.msra.mxu0 %v2392_v0  ;;  %s2335_s19 = sshll.u32 %s3018_s30, 3  ;;  %s472_s22 = scalar_lea.vmem %s3003_s1, %s3018_s30  ;;  %v2505_v4 = vld [vmem:[%s3005_s3] ss:$0 sm:$0xff]  ;;  %v544_v17 = vunpack.c.l.s4 %v2548_v16  ;;  %vm539_vm1 = vcmask 1047556   ;;  %v2549_v24 = vmov 1934713408  }
   0xd   : > { %s2657_s25 = scalar_lea.vmem %s3002_s0, %s2335_s19  ;;  %v568_v25 = vunpack.c.l.s4 %v2549_v24  ;;  %vm1208_vm2 = vcmask 1043456   ;;  %vm1204_vm3 = vcmask 64512   ;;  %vm2061_vm5 = vcmask 130048  }
   0xe   : > { %v478_v2 = vld [vmem:[%s2657_s25] sm:$0xff]  ;;  %v2685_v23 = vunpack.c.0.s8 %v544_v17  ;;  %vm2063_vm6 = vcmask 195584   ;;  %vm2217_vm11 = vcmask 523264  }
   0xf   : > { %v479_v3 = vpack.c.bf16 %v478_v2, %v478_v2  ;;  %v2695_v37 = vunpack.c.0.s8 %v568_v25 }
  0x10   : > { %522 = vmatpush.bf16.msra.mxu0 %v2391_v1 }
  0x13   : > { %2345 = vmatmul.msk.bf16.vlgmr.msra.gmra.mxu0 %vm511_vm0, %v479_v3 }
  0x90   : > { %v524_v5 = vpop.f32.mrf.mxu0 }
  0x91   : > { %v2664_v6 = vadd.f32 %v2505_v4, %v524_v5 }
  0x93   : > { %532 = vrot.lane.b32.xlu1 %v2664_v6, %s2544_s28  ;;  %529 = vrot.lane.b32.xlu0 %v2664_v6, %s2545_s15 }
  0x98   : > { %v526_v7 = vpop.f32.mrf.mxu0 }
  0x9b   : > { %535 = vrot.lane.b32.xlu0 %v2664_v6, %s2546_s16 }
 0x105   : > { %v2669_v8 = vpop.permute.xlu0 %529  ;;  %v2676_v10 = vpop.permute.xlu1 %532 }
 0x106   : > { %v2673_v9 = vpack.i.bf16 %v2664_v6, %v2669_v8 }
 0x108   : > { %2423 = vrot.lane.b32.xlu1 %v2673_v9, %s2547_s17 }
 0x10d   : > { %v2678_v11 = vpop.permute.xlu0 %535 }
 0x10e   : > { %v2682_v12 = vpack.i.bf16 %v2676_v10, %v2678_v11 }
 0x110   : > { %2428 = vrot.lane.b32.xlu2 %v2682_v12, %s2547_s17 }
 0x16a   : > { %v2429_v13 = vpop.permute.xlu2 %2428 }
 0x16b   : > { %v2431_v14 = vunpack.i.h.bf16 %v2429_v13  ;;  %v2430_v15 = vunpack.i.l.bf16 %v2429_v13 }
 0x16d   : > { %v615_v19 = vrot.slane %v2431_v14, 4  ;;  %v627_v20 = vrot.slane %v2430_v15, 4 }
 0x17a   : > { %v2424_v18 = vpop.permute.xlu1 %2423 }
 0x17b   : > { %v2426_v21 = vunpack.i.h.bf16 %v2424_v18  ;;  %v2425_v22 = vunpack.i.l.bf16 %v2424_v18 }
 0x17d   : > { %v617_v26 = vrot.slane %v2426_v21, 4  ;;  %v616_v27 = vsel %vm539_vm1, %v615_v19, %v2426_v21  ;;  %v628_v28 = vsel %vm539_vm1, %v627_v20, %v2425_v22  ;;  %v629_v29 = vrot.slane %v2425_v22, 4 }
 0x17e   : > { %v634_v30 = vperm.slane %v628_v28, %v2685_v23  ;;  %v622_v33 = vperm.slane %v616_v27, %v2685_v23 }
 0x17f   : > { %v618_v31 = vsel %vm539_vm1, %v2431_v14, %v617_v26  ;;  %v630_v32 = vsel %vm539_vm1, %v2430_v15, %v629_v29 }
 0x180   : > { %v626_v34 = vperm.slane %v618_v31, %v2685_v23  ;;  %v638_v35 = vperm.slane %v630_v32, %v2685_v23  ;;  %v639_v36 = vrot.slane %v634_v30, 4  ;;  %v641_v52 = vrot.slane %v622_v33, 4 }
 0x182   : > { %v651_v38 = vrot.slane %v638_v35, 4  ;;  %v653_v39 = vrot.slane %v626_v34, 4  ;;  %v640_v40 = vsel %vm539_vm1, %v639_v36, %v622_v33  ;;  %v642_v59 = vsel %vm539_vm1, %v634_v30, %v641_v52 }
 0x183   : > { %v646_v41 = vperm.slane %v640_v40, %v2695_v37  ;;  %v650_v60 = vperm.slane %v642_v59, %v2695_v37 }
 0x184   : > { %v654_v42 = vsel %vm539_vm1, %v638_v35, %v653_v39  ;;  %v652_v43 = vsel %vm539_vm1, %v651_v38, %v626_v34 }
 0x185   : > { %v663_v44 = vrot.slane %v646_v41, 4  ;;  %v662_v45 = vperm.slane %v654_v42, %v2695_v37  ;;  %v658_v46 = vperm.slane %v652_v43, %v2695_v37  ;;  %v671_v50 = vpack.c.bf16 %v646_v41, %v646_v41 }
 0x186   : > { %v665_v61 = vrot.slane %v650_v60, 4  ;;  %v673_v63 = vpack.c.bf16 %v650_v60, %v650_v60 }
 0x187   : > { %v664_v47 = vsel %vm539_vm1, 0.0, %v663_v44  ;;  %v669_v48 = vrot.slane %v662_v45, 4  ;;  %v667_v49 = vrot.slane %v658_v46, 4  ;;  %v677_v55 = vpack.c.bf16 %v662_v45, %v662_v45 }
 0x188   : > { %v672_v51 = vpack.c.bf16 %v664_v47, %v664_v47  ;;  %v675_v58 = vpack.c.bf16 %v658_v46, %v658_v46  ;;  %v666_v62 = vsel %vm539_vm1, 0.0, %v665_v61 }
 0x189   : > { %v670_v53 = vsel %vm539_vm1, 0.0, %v669_v48  ;;  %v668_v54 = vsel %vm539_vm1, 0.0, %v667_v49  ;;  %v674_v0 = vpack.c.bf16 %v666_v62, %v666_v62 }
 0x18a   : > { %2438 = vxpose.binary.xlu0.c.b16.start.end [1/2] (short) (narrow) %v672_v51, %v671_v50, 16  ;;  %v678_v56 = vpack.c.bf16 %v670_v53, %v670_v53  ;;  %v676_v57 = vpack.c.bf16 %v668_v54, %v668_v54 }
 0x18c   : > { %2432 = vxpose.binary.xlu1.c.b16.start.end [1/2] (short) (narrow) %v678_v56, %v677_v55, 16 }
 0x18d   : > { %2435 = vxpose.binary.xlu2.c.b16.start.end [1/2] (short) (narrow) %v676_v57, %v675_v58, 16 }
 0x19d   : > { %2441 = vxpose.binary.xlu2.c.b16.start.end [1/2] (short) (narrow) %v674_v0, %v673_v63, 16  ;;  %v541_v0 = vrot.slane %v2664_v6, 4 }
 0x206   : > { %2448 = vrot.lane.b32.xlu2 %v2673_v9, %s2550_s18 }
 0x22e   : > { %v2436_v1 = vpop.trf.xlu2 }
 0x22f   : > { %v936_v5 = vrot.slane %v2436_v1, 4  ;;  %v538_v1 = vrot.slane %v2676_v10, 4 }
 0x236   : > { %v2437_v2 = vpop.trf.xlu2  ;;  %v2439_v3 = vpop.trf.xlu0 }
 0x237   : > { %v937_v13 = vsel %vm539_vm1, %v936_v5, %v2439_v3  ;;  %v964_v16 = vrot.slane %v2437_v2, 4  ;;  %v542_v2 = vsel %vm539_vm1, %v2676_v10, %v541_v0  ;;  %v553_v3 = vrot.slane %v2669_v8, 4 }
 0x238   : > { %v2433_v4 = vpop.trf.xlu1  ;;  %v941_v18 = vperm.slane %v937_v13, %v2685_v23  ;;  %v540_v13 = vsel %vm539_vm1, %v538_v1, %v2664_v6 }
 0x239   : > { %v942_v7 = vrot.slane %v2433_v4, 4  ;;  %v551_v4 = vrot.slane %v2678_v11, 4  ;;  %v554_v5 = vsel %vm539_vm1, %v2678_v11, %v553_v3 }
 0x23a   : > { %v950_v24 = vrot.slane %v941_v18, 4 }
 0x23e   : > { %v2442_v14 = vpop.trf.xlu2  ;;  %v2440_v15 = vpop.trf.xlu0 }
 0x23f   : > { %v943_v17 = vsel %vm539_vm1, %v942_v7, %v2442_v14  ;;  %v965_v9 = vsel %vm539_vm1, %v964_v16, %v2440_v15  ;;  %v550_v7 = vperm.slane %v542_v2, %v2685_v23  ;;  %v552_v14 = vsel %vm539_vm1, %v551_v4, %v2669_v8 }
 0x240   : > { %v947_v19 = vperm.slane %v943_v17, %v2685_v23  ;;  %v2434_v20 = vpop.trf.xlu1  ;;  %v969_v26 = vperm.slane %v965_v9, %v2685_v23  ;;  %v546_v15 = vperm.slane %v540_v13, %v2685_v23  ;;  %v558_v16 = vperm.slane %v552_v14, %v2685_v23 }
 0x241   : > { %v970_v22 = vrot.slane %v2434_v20, 4  ;;  %v577_v10 = vrot.slane %v550_v7, 4 }
 0x242   : > { %v948_v21 = vrot.slane %v947_v19, 4  ;;  %v951_v27 = vsel %vm539_vm1, %v947_v19, %v950_v24  ;;  %v978_v31 = vrot.slane %v969_v26, 4  ;;  %v565_v19 = vrot.slane %v546_v15, 4 }
 0x243   : > { %v959_v33 = vperm.slane %v951_v27, %v2695_v37  ;;  %v563_v20 = vrot.slane %v558_v16, 4 }
 0x244   : > { %v949_v25 = vsel %vm539_vm1, %v948_v21, %v941_v18  ;;  %v566_v9 = vsel %vm539_vm1, %v558_v16, %v565_v19 }
 0x245   : > { %v955_v29 = vperm.slane %v949_v25, %v2695_v37  ;;  %v1012_v40 = vshrl.u32 %v959_v33, 16  ;;  %v962_v57 = vrot.slane %v959_v33, 4  ;;  %v564_v25 = vsel %vm539_vm1, %v563_v20, %v546_v15 }
 0x246   : > { %v2443_v28 = vpop.trf.xlu2 }
 0x247   : > { %v971_v30 = vsel %vm539_vm1, %v970_v22, %v2443_v28  ;;  %v960_v36 = vrot.slane %v955_v29, 4  ;;  %v996_v43 = vshrl.u32 %v955_v29, 16  ;;  %v963_v59 = vsel %vm539_vm1, 0, %v962_v57 }
 0x248   : > { %v975_v32 = vperm.slane %v971_v30, %v2685_v23  ;;  %v1020_v61 = vshrl.u32 %v963_v59, 16  ;;  %v574_v22 = vperm.slane %v566_v9, %v2695_v37 }
 0x249   : > { %v961_v44 = vsel %vm539_vm1, 0, %v960_v36 }
 0x24a   : > { %v976_v34 = vrot.slane %v975_v32, 4  ;;  %v979_v35 = vsel %vm539_vm1, %v975_v32, %v978_v31  ;;  %v1004_v52 = vshrl.u32 %v961_v44, 16  ;;  %v589_v27 = vrot.slane %v574_v22, 4 }
 0x24b   : > { %v987_v38 = vperm.slane %v979_v35, %v2695_v37 }
 0x24c   : > { %v977_v39 = vsel %vm539_vm1, %v976_v34, %v969_v26  ;;  %v570_v26 = vperm.slane %v564_v25, %v2695_v37  ;;  %v590_v35 = vsel %vm539_vm1, 0.0, %v589_v27 }
 0x24d   : > { %v1013_v41 = vshrl.u32 %v987_v38, 16  ;;  %v983_v42 = vperm.slane %v977_v39, %v2695_v37  ;;  %v1010_v45 = vpack.i.b16 %v987_v38, %v959_v33  ;;  %v990_v56 = vrot.slane %v987_v38, 4 }
 0x24e   : > { %v587_v33 = vrot.slane %v570_v26, 4 }
 0x24f   : > { %v1014_v46 = vpack.i.b16 %v1013_v41, %v1012_v40  ;;  %v997_v47 = vshrl.u32 %v983_v42, 16  ;;  %v988_v48 = vrot.slane %v983_v42, 4  ;;  %v994_v49 = vpack.i.b16 %v983_v42, %v955_v29 }
 0x250   : > { %v991_v58 = vsel %vm539_vm1, 0, %v990_v56  ;;  %v598_v40 = vpack.c.bf16 %v590_v35, %v590_v35  ;;  %v588_v42 = vsel %vm539_vm1, 0.0, %v587_v33 }
 0x251   : > { %2452 = vxpose.binary.xlu0.c.b16.start.end [1/2] (short) (narrow) %v1014_v46, %v1010_v45, 16  ;;  %v998_v50 = vpack.i.b16 %v997_v47, %v996_v43  ;;  %v989_v51 = vsel %vm539_vm1, 0, %v988_v48  ;;  %v1021_v60 = vshrl.u32 %v991_v58, 16  ;;  %v1018_v62 = vpack.i.b16 %v991_v58, %v963_v59 }
 0x252   : > { %v1005_v53 = vshrl.u32 %v989_v51, 16  ;;  %v1002_v54 = vpack.i.b16 %v989_v51, %v961_v44  ;;  %v597_v43 = vpack.c.bf16 %v574_v22, %v574_v22 }
 0x253   : > { %2444 = vxpose.binary.xlu1.c.b16.start.end [1/2] (short) (narrow) %v998_v50, %v994_v49, 16  ;;  %v1022_v63 = vpack.i.b16 %v1021_v60, %v1020_v61  ;;  %v596_v50 = vpack.c.bf16 %v588_v42, %v588_v42 }
 0x254   : > { %v1006_v55 = vpack.i.b16 %v1005_v53, %v1004_v52 }
 0x256   : > { %2455 = vxpose.binary.xlu2.c.b16.start.end [1/2] (short) (narrow) %v1006_v55, %v1002_v54, 16  ;;  %v595_v54 = vpack.c.bf16 %v570_v26, %v570_v26 }
 0x260   : > { %v2758_v30 = vpop.permute.xlu2 %2448 }
 0x261   : > { %2458 = vxpose.binary.xlu0.c.b16.start.end [1/2] (short) (narrow) %v1022_v63, %v1018_v62, 16 }
 0x2cf   : > { %2462 = vrot.lane.b32.xlu0 %v2682_v12, %s2550_s18  ;;  %v562_v12 = vperm.slane %v554_v5, %v2685_v23 }
 0x2d1   : > { %v575_v17 = vrot.slane %v562_v12, 4  ;;  %v578_v18 = vsel %vm539_vm1, %v562_v12, %v577_v10 }
 0x2d2   : > { %v586_v11 = vperm.slane %v578_v18, %v2695_v37 }
 0x2d3   : > { %v576_v6 = vsel %vm539_vm1, %v575_v17, %v550_v7 }
 0x2d4   : > { %v582_v8 = vperm.slane %v576_v6, %v2695_v37  ;;  %v593_v24 = vrot.slane %v586_v11, 4  ;;  %v601_v36 = vpack.c.bf16 %v586_v11, %v586_v11 }
 0x2d6   : > { %v591_v28 = vrot.slane %v582_v8, 4  ;;  %v594_v29 = vsel %vm539_vm1, 0.0, %v593_v24  ;;  %v599_v44 = vpack.c.bf16 %v582_v8, %v582_v8  ;;  %v762_v45 = vrot.slane %v601_v36, 4 }
 0x2d7   : > { %v602_v31 = vpack.c.bf16 %v594_v29, %v594_v29 }
 0x2d8   : > { %v592_v34 = vsel %vm539_vm1, 0.0, %v591_v28  ;;  %v755_v53 = vrot.slane %v599_v44, 4  ;;  %v763_v55 = vsel %vm539_vm1, %v762_v45, %v597_v43 }
 0x2d9   : > { %v600_v38 = vpack.c.bf16 %v592_v34, %v592_v34  ;;  %v782_v39 = vrot.slane %v602_v31, 4  ;;  %v767_v61 = vperm.slane %v763_v55, %v2685_v23  ;;  %v2450_v55 = vunpack.i.l.bf16 %v2758_v30 }
 0x2da   : > { %v757_v0 = vsel %vm539_vm1, %v755_v53, %v595_v54  ;;  %v2451_v54 = vunpack.i.h.bf16 %v2758_v30 }
 0x2db   : > { %v776_v48 = vrot.slane %v600_v38, 4  ;;  %v783_v51 = vsel %vm539_vm1, %v782_v39, %v598_v40  ;;  %v761_v14 = vperm.slane %v757_v0, %v2685_v23  ;;  %v768_v15 = vrot.slane %v767_v61, 4 }
 0x2dc   : > { %v787_v58 = vperm.slane %v783_v51, %v2685_v23 }
 0x2dd   : > { %v777_v60 = vsel %vm539_vm1, %v776_v48, %v596_v50  ;;  %v769_v11 = vsel %vm539_vm1, %v768_v15, %v761_v14 }
 0x2de   : > { %v781_v3 = vperm.slane %v777_v60, %v2685_v23  ;;  %v788_v4 = vrot.slane %v787_v58, 4  ;;  %v773_v8 = vperm.slane %v769_v11, %v2695_v37  ;;  %v705_v58 = vrot.slane %v2450_v55, 4 }
 0x2e0   : > { %v789_v18 = vsel %vm539_vm1, %v788_v4, %v781_v3  ;;  %v799_v43 = vshrl.u32 %v773_v8, 16 }
 0x2e1   : > { %v793_v6 = vperm.slane %v789_v18, %v2695_v37 }
 0x2e3   : > { %v794_v26 = vrot.slane %v793_v6, 4  ;;  %v800_v36 = vshrl.u32 %v793_v6, 16  ;;  %v798_v42 = vpack.i.b16 %v793_v6, %v773_v8 }
 0x2e5   : > { %v795_v44 = vsel %vm539_vm1, 0, %v794_v26 }
 0x2e6   : > { %v806_v51 = vshrl.u32 %v795_v44, 16 }
 0x2f7   : > { %v2456_v41 = vpop.trf.xlu2 }
 0x2fd   : > { %v2453_v21 = vpop.trf.xlu0 }
 0x2fe   : > { %v1152_v47 = vrot.slane %v2453_v21, 4 }
 0x2ff   : > { %v2445_v46 = vpop.trf.xlu1  ;;  %v2457_v2 = vpop.trf.xlu2 }
 0x300   : > { %v1153_v56 = vsel %vm539_vm1, %v1152_v47, %v2445_v46  ;;  %v801_v47 = vpack.i.b16 %v800_v36, %v799_v43  ;;  %v2551_v36 = vmov 0.0  }
 0x301   : > { %v1157_v62 = vperm.slane %v1153_v56, %v2685_v23 }
 0x305   : > { %v2454_v32 = vpop.trf.xlu0 }
 0x306   : > { %v1172_v1 = vrot.slane %v2454_v32, 4  ;;  %v774_v32 = vrot.slane %v773_v8, 4 }
 0x307   : > { %v2446_v5 = vpop.trf.xlu1 }
 0x308   : > { %v1173_v10 = vsel %vm539_vm1, %v1172_v1, %v2446_v5  ;;  %v775_v48 = vsel %vm539_vm1, 0, %v774_v32 }
 0x309   : > { %v1177_v20 = vperm.slane %v1173_v10, %v2685_v23  ;;  %v804_v50 = vpack.i.b16 %v795_v44, %v775_v48 }
 0x30d   : > { %v2459_v49 = vpop.trf.xlu0 }
 0x30e   : > { %v1158_v52 = vrot.slane %v2459_v49, 4 }
 0x310   : > { %v1159_v57 = vsel %vm539_vm1, %v1158_v52, %v2456_v41  ;;  %v805_v52 = vshrl.u32 %v775_v48, 16 }
 0x311   : > { %v1163_v59 = vperm.slane %v1159_v57, %v2685_v23  ;;  %v693_v57 = vrot.slane %v2451_v54, 4 }
 0x312   : > { %v807_v53 = vpack.i.b16 %v806_v51, %v805_v52 }
 0x313   : > { %v1164_v63 = vrot.slane %v1163_v59, 4 }
 0x315   : > { %v2460_v7 = vpop.trf.xlu0  ;;  %v1165_v13 = vsel %vm539_vm1, %v1164_v63, %v1157_v62 }
 0x316   : > { %v1178_v12 = vrot.slane %v2460_v7, 4  ;;  %v1169_v17 = vperm.slane %v1165_v13, %v2695_v37 }
 0x318   : > { %v1179_v16 = vsel %vm539_vm1, %v1178_v12, %v2457_v2  ;;  %v1170_v21 = vrot.slane %v1169_v17, 4  ;;  %v1195_v25 = vshrl.u32 %v1169_v17, 16 }
 0x319   : > { %v1183_v19 = vperm.slane %v1179_v16, %v2685_v23 }
 0x31a   : > { %v1171_v29 = vsel %vm539_vm1, 0, %v1170_v21 }
 0x31b   : > { %v1184_v9 = vrot.slane %v1183_v19, 4  ;;  %v1201_v39 = vshrl.u32 %v1171_v29, 16 }
 0x31d   : > { %v1185_v22 = vsel %vm539_vm1, %v1184_v9, %v1177_v20 }
 0x31e   : > { %v1189_v24 = vperm.slane %v1185_v22, %v2695_v37 }
 0x320   : > { %v1194_v27 = vpack.i.b16 %v1189_v24, %v1169_v17  ;;  %v1196_v28 = vshrl.u32 %v1189_v24, 16  ;;  %v1190_v31 = vrot.slane %v1189_v24, 4 }
 0x322   : > { %v1210_v33 = vsel %vm1208_vm2, %v1194_v27, 0  ;;  %v1197_v34 = vpack.i.b16 %v1196_v28, %v1195_v25  ;;  %v1191_v35 = vsel %vm539_vm1, 0, %v1190_v31  ;;  %v480_v31 = vlaneseq }
 0x323   : > { %1219 = vmatpush.bf16.msra.mxu1 %v1210_v33  ;;  %v1200_v38 = vpack.i.b16 %v1191_v35, %v1171_v29  ;;  %v1202_v40 = vshrl.u32 %v1191_v35, 16  ;;  %v2504_v35 = vld [vmem:[%s472_s22] ss:$0 sm:$0xff]  ;;  %s2552_s22 = smov 24  }
 0x324   : > { %v1229_v41 = vsel %vm1208_vm2, %v1197_v34, 0  ;;  %v481_v32 = vshrl.u32 %v480_v31, 7  ;;  %v483_v33 = vand.u32 127, %v480_v31 }
 0x325   : > { %1238 = vmatpush.bf16.msra.mxu2 %v1229_v41  ;;  %v1248_v45 = vsel %vm1208_vm2, %v1200_v38, 0  ;;  %v1203_v46 = vpack.i.b16 %v1202_v40, %v1201_v39 }
 0x326   : > { %2346 = vmatmul.msk.bf16.vlgmr.msra.gmra.mxu1 %vm1204_vm3, %v798_v42  ;;  %1257 = vmatpush.bf16.msra.mxu3 %v1248_v45  ;;  %vm484_vm4 = vcmp.gt.s32.totalorder %v483_v33, %v481_v32 }
 0x327   : > { %v1267_v49 = vsel %vm1208_vm2, %v1203_v46, 0  ;;  %v485_v38 = vsel %vm484_vm4, -1e+09, %v2551_v36 }
 0x328   : > { %2347 = vmatmul.msk.bf16.vlgmr.msra.gmra.mxu2 %vm1204_vm3, %v801_v47  ;;  %1276 = vmatpush.bf16.msrb.mxu1 %v1267_v49  ;;  %v490_v40 = vadd.f32 %v2504_v35, %v485_v38 }
 0x329   : > { %2348 = vmatmul.msk.bf16.vlgmr.msra.gmra.mxu3 %vm1204_vm3, %v804_v50 }
 0x336   : > { %2349 = vmatmul.msk.bf16.vlgmr.msrb.gmra.mxu1 %vm1204_vm3, %v807_v53 }
 0x341   : > { %v2463_v56 = vpop.permute.xlu0 %2462 }
 0x342   : > { %v2465_v59 = vunpack.i.h.bf16 %v2463_v56  ;;  %v2464_v60 = vunpack.i.l.bf16 %v2463_v56 }
 0x344   : > { %v691_v61 = vrot.slane %v2465_v59, 4  ;;  %v694_v62 = vsel %vm539_vm1, %v2465_v59, %v693_v57  ;;  %v703_v63 = vrot.slane %v2464_v60, 4  ;;  %v706_v0 = vsel %vm539_vm1, %v2464_v60, %v705_v58 }
 0x345   : > { %v702_v1 = vperm.slane %v694_v62, %v2685_v23  ;;  %v714_v2 = vperm.slane %v706_v0, %v2685_v23 }
 0x346   : > { %v692_v3 = vsel %vm539_vm1, %v691_v61, %v2451_v54  ;;  %v704_v4 = vsel %vm539_vm1, %v703_v63, %v2450_v55 }
 0x347   : > { %v729_v30 = vrot.slane %v702_v1, 4  ;;  %v710_v5 = vperm.slane %v704_v4, %v2685_v23  ;;  %v727_v7 = vrot.slane %v714_v2, 4  ;;  %v698_v13 = vperm.slane %v692_v3, %v2685_v23 }
 0x349   : > { %v715_v12 = vrot.slane %v710_v5, 4  ;;  %v728_v14 = vsel %vm539_vm1, %v727_v7, %v702_v1  ;;  %v730_v15 = vsel %vm539_vm1, %v714_v2, %v729_v30  ;;  %v717_v19 = vrot.slane %v698_v13, 4 }
 0x34a   : > { %v734_v10 = vperm.slane %v728_v14, %v2695_v37  ;;  %v738_v59 = vperm.slane %v730_v15, %v2695_v37 }
 0x34b   : > { %v716_v16 = vsel %vm539_vm1, %v715_v12, %v698_v13  ;;  %v718_v24 = vsel %vm539_vm1, %v710_v5, %v717_v19 }
 0x34c   : > { %v743_v17 = vrot.slane %v734_v10, 4  ;;  %v722_v18 = vperm.slane %v716_v16, %v2695_v37  ;;  %v751_v9 = vpack.c.bf16 %v734_v10, %v734_v10  ;;  %v726_v25 = vperm.slane %v718_v24, %v2695_v37 }
 0x34d   : > { %v745_v60 = vrot.slane %v738_v59, 4  ;;  %v753_v62 = vpack.c.bf16 %v738_v59, %v738_v59 }
 0x34e   : > { %v744_v11 = vsel %vm539_vm1, 0.0, %v743_v17  ;;  %v739_v20 = vrot.slane %v722_v18, 4  ;;  %v747_v22 = vpack.c.bf16 %v722_v18, %v722_v18  ;;  %v741_v26 = vrot.slane %v726_v25, 4 }
 0x34f   : > { %v752_v6 = vpack.c.bf16 %v744_v11, %v744_v11  ;;  %v749_v28 = vpack.c.bf16 %v726_v25, %v726_v25  ;;  %v746_v61 = vsel %vm539_vm1, 0.0, %v745_v60 }
 0x350   : > { %v740_v21 = vsel %vm539_vm1, 0.0, %v739_v20  ;;  %v742_v27 = vsel %vm539_vm1, 0.0, %v741_v26  ;;  %v754_v63 = vpack.c.bf16 %v746_v61, %v746_v61 }
 0x351   : > { %2466 = vxpose.binary.xlu0.c.b16.start.end [1/2] (short) (narrow) %v752_v6, %v751_v9, 16  ;;  %v748_v8 = vpack.c.bf16 %v740_v21, %v740_v21  ;;  %v750_v29 = vpack.c.bf16 %v742_v27, %v742_v27 }
 0x353   : > { %2469 = vxpose.binary.xlu1.c.b16.start.end [1/2] (short) (narrow) %v748_v8, %v747_v22, 16 }
 0x361   : > { %2475 = vxpose.binary.xlu0.c.b16.start.end [1/2] (short) (narrow) %v750_v29, %v749_v28, 16 }
 0x3a3   : > { %v1221_v34 = vpop.f32.mrf.mxu1 }
 0x3a4   : > { %v1282_v39 = vmul.f32 0.35355338, %v1221_v34 }
 0x3a6   : > { %v2824_v45 = vadd.f32 %v1282_v39, %v490_v40 }
 0x3a8   : > { %v1290_v49 = vsel %vm1204_vm3, %v2824_v45, -inf }
 0x3ab   : > { %v1223_v41 = vpop.f32.mrf.mxu1  ;;  %v1240_v42 = vpop.f32.mrf.mxu2 }
 0x3ac   : > { %v1259_v43 = vpop.f32.mrf.mxu3  ;;  %v1283_v48 = vmul.f32 0.35355338, %v1240_v42 }
 0x3ad   : > { %v1284_v44 = vmul.f32 0.35355338, %v1259_v43 }
 0x3ae   : > { %v1287_v53 = vadd.f32 %v1283_v48, %v490_v40 }
 0x3af   : > { %v1288_v46 = vadd.f32 %v1284_v44, %v490_v40 }
 0x3b0   : > { %v1293_v55 = vsel %vm1204_vm3, %v1287_v53, -inf }
 0x3b1   : > { %v1296_v47 = vsel %vm1204_vm3, %v1288_v46, -inf }
 0x3b2   : > { %1297 = vmax.xlane.f32.xlu2 %v1296_v47 }
 0x3b3   : > { %v1242_v50 = vpop.f32.mrf.mxu2  ;;  %1291 = vmax.xlane.f32.xlu1 %v1290_v49  ;;  %v1278_v51 = vpop.f32.mrf.mxu1 }
 0x3b4   : > { %v1261_v52 = vpop.f32.mrf.mxu3  ;;  %v1285_v54 = vmul.f32 0.35355338, %v1278_v51 }
 0x3b6   : > { %v1289_v57 = vadd.f32 %v1285_v54, %v490_v40 }
 0x3b8   : > { %v1299_v58 = vsel %vm1204_vm3, %v1289_v57, -inf }
 0x3bb   : > { %1294 = vmax.xlane.f32.xlu1 %v1293_v55  ;;  %v1280_v56 = vpop.f32.mrf.mxu1 }
 0x3c3   : > { %1300 = vmax.xlane.f32.xlu1 %v1299_v58 }
 0x3db   : > { %2472 = vxpose.binary.xlu2.c.b16.start.end [1/2] (short) (narrow) %v754_v63, %v753_v62, 16 }
 0x3fd   : > { %v2467_v20 = vpop.trf.xlu0 }
 0x3fe   : > { %v1466_v6 = vrot.slane %v2467_v20, 4 }
 0x3ff   : > { %v2470_v0 = vpop.trf.xlu1 }
 0x400   : > { %v1467_v21 = vsel %vm539_vm1, %v1466_v6, %v2470_v0 }
 0x401   : > { %v1471_v8 = vperm.slane %v1467_v21, %v2685_v23 }
 0x403   : > { %v1480_v28 = vrot.slane %v1471_v8, 4 }
 0x405   : > { %v2468_v9 = vpop.trf.xlu0 }
 0x406   : > { %v1494_v25 = vrot.slane %v2468_v9, 4 }
 0x407   : > { %v2471_v1 = vpop.trf.xlu1 }
 0x408   : > { %v1495_v31 = vsel %vm539_vm1, %v1494_v25, %v2471_v1 }
 0x409   : > { %v1499_v34 = vperm.slane %v1495_v31, %v2685_v23 }
 0x40b   : > { %v1508_v43 = vrot.slane %v1499_v34, 4 }
 0x40d   : > { %v2476_v22 = vpop.trf.xlu0 }
 0x415   : > { %v2477_v39 = vpop.trf.xlu0 }
 0x425   : > { %v1298_v7 = vpop.xlane.xlu2 %1297 }
 0x426   : > { %v2833_v2 = vpop.xlane.xlu1 %1291  ;;  %v1304_v15 = vsub.f32 %v1288_v46, %v1298_v7 }
 0x428   : > { %v1310_v16 = vmul.f32 1.442695, %v1304_v15 }
 0x42e   : > { %v1295_v3 = vpop.xlane.xlu1 %1294 }
 0x42f   : > { %v1303_v4 = vsub.f32 %v1287_v53, %v1295_v3 }
 0x431   : > { %v1308_v30 = vmul.f32 1.442695, %v1303_v4 }
 0x433   : > { %2513 = vpow2.f32 %v1308_v30 }
 0x436   : > { %v1301_v5 = vpop.xlane.xlu1 %1300 }
 0x437   : > { %v1305_v13 = vsub.f32 %v1289_v57, %v1301_v5 }
 0x439   : > { %v2835_v12 = vpop.eup %2513  ;;  %v1312_v14 = vmul.f32 1.442695, %v1305_v13 }
 0x43a   : > { %v1317_v10 = vsel %vm1204_vm3, %v2835_v12, 0.0 }
 0x43b   : > { %2515 = vpow2.f32 %v1312_v14  ;;  %1318 = vadd.xlane.f32.xlu1 %v1317_v10 }
 0x43c   : > { %2517 = vpow2.f32 %v1310_v16 }
 0x441   : > { %v2839_v17 = vpop.eup %2515 }
 0x442   : > { %v1323_v18 = vsel %vm1204_vm3, %v2839_v17, 0.0  ;;  %v2843_v19 = vpop.eup %2517 }
 0x443   : > { %1324 = vadd.xlane.f32.xlu1 %v1323_v18  ;;  %v1320_v11 = vsel %vm1204_vm3, %v2843_v19, 0.0 }
 0x44c   : > { %1321 = vadd.xlane.f32.xlu2 %v1320_v11 }
 0x47c   : > { %v2473_v24 = vpop.trf.xlu2 }
 0x47d   : > { %v1472_v26 = vrot.slane %v2473_v24, 4 }
 0x47f   : > { %v1473_v27 = vsel %vm539_vm1, %v1472_v26, %v2476_v22 }
 0x480   : > { %v1477_v29 = vperm.slane %v1473_v27, %v2685_v23 }
 0x482   : > { %v1478_v32 = vrot.slane %v1477_v29, 4  ;;  %v1481_v33 = vsel %vm539_vm1, %v1477_v29, %v1480_v28  ;;  %v1302_v29 = vsub.f32 %v2824_v45, %v2833_v2 }
 0x483   : > { %v1489_v36 = vperm.slane %v1481_v33, %v2695_v37 }
 0x484   : > { %v1479_v35 = vsel %vm539_vm1, %v1478_v32, %v1471_v8  ;;  %v2474_v38 = vpop.trf.xlu2  ;;  %v1306_v31 = vmul.f32 1.442695, %v1302_v29 }
 0x485   : > { %v1500_v40 = vrot.slane %v2474_v38, 4  ;;  %v2857_v41 = vperm.slane %v1479_v35, %v2695_v37  ;;  %v1492_v46 = vrot.slane %v1489_v36, 4  ;;  %v1542_v52 = vshrl.u32 %v1489_v36, 16 }
 0x487   : > { %v1501_v42 = vsel %vm539_vm1, %v1500_v40, %v2477_v39  ;;  %v1490_v49 = vrot.slane %v2857_v41, 4  ;;  %v1493_v53 = vsel %vm539_vm1, 0, %v1492_v46  ;;  %v1526_v59 = vshrl.u32 %v2857_v41, 16 }
 0x488   : > { %v1505_v44 = vperm.slane %v1501_v42, %v2685_v23  ;;  %v1550_v1 = vshrl.u32 %v1493_v53, 16 }
 0x489   : > { %v1491_v58 = vsel %vm539_vm1, 0, %v1490_v49 }
 0x48a   : > { %v1506_v47 = vrot.slane %v1505_v44, 4  ;;  %v1509_v48 = vsel %vm539_vm1, %v1505_v44, %v1508_v43  ;;  %v1534_v5 = vshrl.u32 %v1491_v58, 16 }
 0x48b   : > { %v1517_v50 = vperm.slane %v1509_v48, %v2695_v37 }
 0x48c   : > { %v1507_v51 = vsel %vm539_vm1, %v1506_v47, %v1499_v34 }
 0x48d   : > { %v1513_v54 = vperm.slane %v1507_v51, %v2695_v37  ;;  %v1540_v55 = vpack.i.b16 %v1517_v50, %v1489_v36  ;;  %v1543_v56 = vshrl.u32 %v1517_v50, 16  ;;  %v1520_v57 = vrot.slane %v1517_v50, 4 }
 0x48f   : > { %v1544_v60 = vpack.i.b16 %v1543_v56, %v1542_v52  ;;  %v1521_v61 = vsel %vm539_vm1, 0, %v1520_v57  ;;  %v1518_v62 = vrot.slane %v1513_v54, 4  ;;  %v1524_v63 = vpack.i.b16 %v1513_v54, %v2857_v41 }
 0x490   : > { %v1548_v0 = vpack.i.b16 %v1521_v61, %v1493_v53  ;;  %v1551_v3 = vshrl.u32 %v1521_v61, 16  ;;  %v1527_v4 = vshrl.u32 %v1513_v54, 16 }
 0x491   : > { %2484 = vxpose.binary.xlu2.c.b16.start.end [1/2] (short) (narrow) %v1544_v60, %v1540_v55, 16  ;;  %v1519_v30 = vsel %vm539_vm1, 0, %v1518_v62 }
 0x492   : > { %v1552_v7 = vpack.i.b16 %v1551_v3, %v1550_v1  ;;  %v1532_v13 = vpack.i.b16 %v1519_v30, %v1491_v58  ;;  %v1535_v14 = vshrl.u32 %v1519_v30, 16  ;;  %v1528_v15 = vpack.i.b16 %v1527_v4, %v1526_v59 }
 0x494   : > { %2478 = vxpose.binary.xlu0.c.b16.start.end [1/2] (short) (narrow) %v1552_v7, %v1548_v0, 16  ;;  %v1536_v10 = vpack.i.b16 %v1535_v14, %v1534_v5 }
 0x496   : > { %2481 = vxpose.binary.xlu1.c.b16.start.end [1/2] (short) (narrow) %v1536_v10, %v1532_v13, 16 }
 0x4ae   : > { %v1319_v16 = vpop.xlane.xlu1 %1318 }
 0x4af   : > { %2519 = vrcp.f32 %v1319_v16 }
 0x4b5   : > { %v2520_v18 = vpop.eup %2519 }
 0x4b6   : > { %v1325_v11 = vpop.xlane.xlu1 %1324  ;;  %v1331_v20 = vmul.f32 %v2520_v18, %v2835_v12 }
 0x4b7   : > { %2521 = vrcp.f32 %v1325_v11 }
 0x4b8   : > { %v1335_v9 = vpack.c.bf16 %v1331_v20, %v1331_v20 }
 0x4ba   : > { %v1757_v6 = vsel %vm1204_vm3, %v1335_v9, 0 }
 0x4bb   : > { %1766 = vmatpush.bf16.xpose.msrb.mxu3 %v1757_v6 }
 0x4bd   : > { %v2522_v21 = vpop.eup %2521 }
 0x4be   : > { %v1333_v22 = vmul.f32 %v2522_v21, %v2839_v17 }
 0x4bf   : > { %v1322_v8 = vpop.xlane.xlu2 %1321 }
 0x4c0   : > { %2523 = vrcp.f32 %v1322_v8  ;;  %v1337_v24 = vpack.c.bf16 %v1333_v22, %v1333_v22 }
 0x4c1   : > { %2525 = vpow2.f32 %v1306_v31 }
 0x4c2   : > { %v1795_v25 = vsel %vm1204_vm3, %v1337_v24, 0 }
 0x4c3   : > { %1804 = vmatpush.bf16.xpose.msra.mxu1 %v1795_v25 }
 0x4c6   : > { %v2524_v26 = vpop.eup %2523 }
 0x4c7   : > { %v1332_v27 = vmul.f32 %v2524_v26, %v2843_v19  ;;  %v2526_v32 = vpop.eup %2525 }
 0x4c8   : > { %v1314_v17 = vsel %vm1204_vm3, %v2526_v32, 0.0 }
 0x4c9   : > { %v1336_v28 = vpack.c.bf16 %v1332_v27, %v1332_v27 }
 0x4cb   : > { %v1776_v12 = vsel %vm1204_vm3, %v1336_v28, 0 }
 0x4cc   : > { %1785 = vmatpush.bf16.xpose.msrb.mxu0 %v1776_v12 }
 0x505   : > { %1315 = vadd.xlane.f32.xlu0 %v1314_v17 }
 0x52e   : > { %2487 = vxpose.binary.xlu0.c.b16.start.end [1/2] (short) (narrow) %v1528_v15, %v1524_v63, 16 }
 0x532   : > { %v2485_v45 = vpop.trf.xlu2 }
 0x533   : > { %v1682_v42 = vrot.slane %v2485_v45, 4 }
 0x53a   : > { %v2486_v51 = vpop.trf.xlu2 }
 0x53b   : > { %v1702_v54 = vrot.slane %v2486_v51, 4 }
 0x540   : > { %v2479_v33 = vpop.trf.xlu0 }
 0x541   : > { %v1688_v41 = vrot.slane %v2479_v33, 4 }
 0x542   : > { %v2482_v40 = vpop.trf.xlu1 }
 0x543   : > { %v1689_v2 = vsel %vm539_vm1, %v1688_v41, %v2482_v40 }
 0x544   : > { %v1693_v43 = vperm.slane %v1689_v2, %v2685_v23 }
 0x546   : > { %v1694_v49 = vrot.slane %v1693_v43, 4 }
 0x548   : > { %v2480_v34 = vpop.trf.xlu0 }
 0x549   : > { %v1708_v44 = vrot.slane %v2480_v34, 4 }
 0x54a   : > { %v2483_v46 = vpop.trf.xlu1 }
 0x54b   : > { %v1709_v52 = vsel %vm539_vm1, %v1708_v44, %v2483_v46 }
 0x54c   : > { %v1713_v55 = vperm.slane %v1709_v52, %v2685_v23 }
 0x54e   : > { %v1714_v59 = vrot.slane %v1713_v55, 4 }
 0x578   : > { %v1316_v35 = vpop.xlane.xlu0 %1315 }
 0x579   : > { %2527 = vrcp.f32 %v1316_v35 }
 0x57f   : > { %v2528_v36 = vpop.eup %2527 }
 0x580   : > { %v1330_v19 = vmul.f32 %v2528_v36, %v2526_v32 }
 0x582   : > { %v1334_v38 = vpack.c.bf16 %v1330_v19, %v1330_v19 }
 0x584   : > { %v1738_v39 = vsel %vm1204_vm3, %v1334_v38, 0 }
 0x585   : > { %1747 = vmatpush.bf16.xpose.msrb.mxu2 %v1738_v39 }
 0x5da   : > { %v2488_v47 = vpop.trf.xlu0 }
 0x5db   : > { %v1683_v48 = vsel %vm539_vm1, %v1682_v42, %v2488_v47 }
 0x5dc   : > { %v1687_v50 = vperm.slane %v1683_v48, %v2685_v23 }
 0x5de   : > { %v1695_v53 = vsel %vm539_vm1, %v1694_v49, %v1687_v50 }
 0x5df   : > { %v1699_v56 = vperm.slane %v1695_v53, %v2695_v37 }
 0x5e1   : > { %v1700_v61 = vrot.slane %v1699_v56, 4  ;;  %v1725_v0 = vshrl.u32 %v1699_v56, 16 }
 0x5e2   : > { %v2489_v57 = vpop.trf.xlu0 }
 0x5e3   : > { %v1703_v58 = vsel %vm539_vm1, %v1702_v54, %v2489_v57  ;;  %v1701_v4 = vsel %vm539_vm1, 0, %v1700_v61 }
 0x5e4   : > { %v1707_v60 = vperm.slane %v1703_v58, %v2685_v23  ;;  %v1731_v14 = vshrl.u32 %v1701_v4, 16 }
 0x5e6   : > { %v1715_v62 = vsel %vm539_vm1, %v1714_v59, %v1707_v60 }
 0x5e7   : > { %v1719_v63 = vperm.slane %v1715_v62, %v2695_v37 }
 0x5e9   : > { %v1724_v1 = vpack.i.b16 %v1719_v63, %v1699_v56  ;;  %v1726_v3 = vshrl.u32 %v1719_v63, 16  ;;  %v1720_v30 = vrot.slane %v1719_v63, 4 }
 0x5eb   : > { %2350 = vmatmul.msk.bf16.vlgmr.msrb.gmra.mxu2 %vm1204_vm3, %v1724_v1  ;;  %v1727_v5 = vpack.i.b16 %v1726_v3, %v1725_v0  ;;  %v1721_v7 = vsel %vm539_vm1, 0, %v1720_v30 }
 0x5ec   : > { %v1730_v13 = vpack.i.b16 %v1721_v7, %v1701_v4  ;;  %v1732_v15 = vshrl.u32 %v1721_v7, 16 }
 0x5ed   : > { %2351 = vmatmul.msk.bf16.vlgmr.msrb.gmra.mxu3 %vm1204_vm3, %v1727_v5 }
 0x5ee   : > { %v1733_v10 = vpack.i.b16 %v1732_v15, %v1731_v14  ;;  %2352 = vmatmul.msk.bf16.vlgmr.msrb.gmra.mxu0 %vm1204_vm3, %v1730_v13 }
 0x5f0   : > { %2353 = vmatmul.msk.bf16.vlgmr.msra.gmra.mxu1 %vm1204_vm3, %v1733_v10 }
 0x66b   : > { %v1787_v16 = vpop.f32.mrf.mxu0 }
 0x66d   : > { %v1806_v18 = vpop.f32.mrf.mxu1 }
 0x66e   : > { %v1749_v11 = vpop.f32.mrf.mxu2 }
 0x66f   : > { %v2490_v20 = vpack.i.bf16 %v1749_v11, %v1787_v16 }
 0x670   : > { %v1768_v9 = vpop.f32.mrf.mxu3 }
 0x671   : > { %v2497_v6 = vpack.i.bf16 %v1768_v9, %v1806_v18  ;;  %2491 = vxpose.xlu0.b32.start.end [1/1] (short) (narrow) %v2490_v20, 8 }
 0x673   : > { %v1789_v21 = vpop.f32.mrf.mxu0  ;;  %2498 = vxpose.xlu1.b32.start.end [1/1] (short) (narrow) %v2497_v6, 8 }
 0x675   : > { %v1808_v22 = vpop.f32.mrf.mxu1 }
 0x676   : > { %v1751_v8 = vpop.f32.mrf.mxu2 }
 0x678   : > { %v1770_v24 = vpop.f32.mrf.mxu3 }
 0x715   : > { %v2492_v25 = vpop.trf.xlu0 }
 0x716   : > { %v2496_v26 = vunpack.i.h.bf16 %v2492_v25  ;;  %v2493_v27 = vunpack.i.l.bf16 %v2492_v25 }
 0x717   : > { %v2499_v28 = vpop.trf.xlu1 }
 0x718   : > { %v1940_v12 = vrot.slane %v2496_v26, 4  ;;  %v1938_v29 = vrot.slane %v2493_v27, 4  ;;  %v2503_v31 = vunpack.i.h.bf16 %v2499_v28  ;;  %v2500_v32 = vunpack.i.l.bf16 %v2499_v28 }
 0x71a   : > { %v1939_v17 = vsel %vm539_vm1, %v1938_v29, %v2496_v26  ;;  %v1941_v33 = vsel %vm539_vm1, %v2493_v27, %v1940_v12  ;;  %v1952_v34 = vrot.slane %v2503_v31, 4  ;;  %v1950_v19 = vrot.slane %v2500_v32, 4  ;;  %v2393_v29 = vld [vmem:[%s3006_s4] sm:$0xff] }
 0x71b   : > { %v1945_v35 = vperm.slane %v1939_v17, %v2685_v23  ;;  %v1949_v36 = vperm.slane %v1941_v33, %v2685_v23 }
 0x71c   : > { %v1953_v38 = vsel %vm539_vm1, %v2500_v32, %v1952_v34  ;;  %v1951_v41 = vsel %vm539_vm1, %v1950_v19, %v2503_v31  ;;  %v2506_v19 = vld [vmem:[%s3007_s5] ss:$0 sm:$0xff] }
 0x71d   : > { %v1964_v39 = vrot.slane %v1945_v35, 4  ;;  %v1976_v40 = vrot.slane %v1949_v36, 4  ;;  %v1961_v45 = vperm.slane %v1953_v38, %v2685_v23  ;;  %v1957_v2 = vperm.slane %v1951_v41, %v2685_v23 }
 0x71f   : > { %v1974_v42 = vrot.slane %v1961_v45, 4  ;;  %v1977_v43 = vsel %vm539_vm1, %v1961_v45, %v1976_v40  ;;  %v1962_v44 = vrot.slane %v1957_v2, 4  ;;  %v1965_v46 = vsel %vm539_vm1, %v1957_v2, %v1964_v39  ;;  %v2535_v40 = vld [vmem:[%s2657_s25] sm:$0xff]  ;;  %s476_s25 = scalar_lea.vmem %s3016_s14, %s2335_s19 }
 0x720   : > { %v1985_v47 = vperm.slane %v1977_v43, %v2695_v37  ;;  %v1973_v48 = vperm.slane %v1965_v46, %v2695_v37 }
 0x721   : > { %v1975_v49 = vsel %vm539_vm1, %v1974_v42, %v1949_v36  ;;  %v1963_v50 = vsel %vm539_vm1, %v1962_v44, %v1945_v35  ;;  %v2555_v42 = vmov 32.0  }
 0x722   : > { %v1981_v51 = vperm.slane %v1975_v49, %v2695_v37  ;;  %v1992_v52 = vrot.slane %v1985_v47, 4  ;;  %v1969_v53 = vperm.slane %v1963_v50, %v2695_v37  ;;  %v1988_v54 = vrot.slane %v1973_v48, 4 }
 0x723   : > { %2529 = vrcp.f32 %v2555_v42 }
 0x724   : > { %v1990_v55 = vrot.slane %v1981_v51, 4  ;;  %v1993_v56 = vsel %vm539_vm1, 0.0, %v1992_v52  ;;  %v2005_v57 = vsel %vm539_vm1, %v1992_v52, %v1981_v51  ;;  %v1989_v58 = vsel %vm539_vm1, 0.0, %v1988_v54 }
 0x725   : > { %v1986_v59 = vrot.slane %v1969_v53, 4  ;;  %v1994_v60 = vsel %vm539_vm1, %v1988_v54, %v1969_v53  ;;  %v2009_v61 = vperm.slane %v2005_v57, %v2685_v23  ;;  %v1999_v0 = vrot.slane %v1989_v58, 4  ;;  %v2400_v57 = vld [vmem:[%s3012_s10 + $0x18] sm:$0xff] }
 0x726   : > { %v1991_v62 = vsel %vm539_vm1, 0.0, %v1990_v55  ;;  %v1998_v63 = vperm.slane %v1994_v60, %v2685_v23  ;;  %v2010_v1 = vrot.slane %v1993_v56, 4  ;;  %v2396_v55 = vld [vmem:[%s3010_s8 + $0x8] sm:$0xff]  ;;  %v2395_v56 = vld [vmem:[%s3010_s8] sm:$0xff]  ;;  %2225 = vmatpush.bf16.msra.mxu0 %v2400_v57  ;;  %v2399_v60 = vld [vmem:[%s3012_s10 + $0x10] sm:$0xff] }
 0x727   : > { %v1987_v3 = vsel %vm539_vm1, 0.0, %v1986_v59  ;;  %v2030_v4 = vrot.slane %v2009_v61, 4  ;;  %2172 = vmatpush.bf16.msra.mxu3 %v2396_v55 }
 0x728   : > { %v2000_v30 = vsel %vm539_vm1, %v1999_v0, %v1987_v3  ;;  %v2011_v5 = vsel %vm539_vm1, %v2010_v1, %v1991_v62  ;;  %v2018_v7 = vrot.slane %v1998_v63, 4  ;;  %v2398_v62 = vld [vmem:[%s3012_s10 + $0x8] sm:$0xff] }
 0x729   : > { %v2004_v13 = vperm.slane %v2000_v30, %v2685_v23  ;;  %v2015_v14 = vperm.slane %v2011_v5, %v2685_v23  ;;  %v2530_v43 = vpop.eup %2529  ;;  %v2507_v5 = vld [vmem:[%s3008_s6] ss:$0 sm:$0xff] }
 0x72a   : > { %v2109_v44 = vmul.f32 32.0, %v2530_v43  ;;  %vm2113_vm7 = vweird.f32 %v2530_v43  ;;  %2226 = vmatpush.bf16.msra.mxu0 %v2399_v60 }
 0x72b   : > { %v2019_v15 = vsel %vm539_vm1, %v2004_v13, %v2018_v7  ;;  %v2031_v10 = vsel %vm539_vm1, %v2015_v14, %v2030_v4  ;;  %v2016_v16 = vrot.slane %v2004_v13, 4  ;;  %v2028_v18 = vrot.slane %v2015_v14, 4  ;;  %2173 = vmatpush.bf16.msra.mxu3 %v2395_v56  ;;  %v2508_v13 = vld [vmem:[%s3009_s7] ss:$0 sm:$0xff] }
 0x72c   : > { %v2027_v11 = vperm.slane %v2019_v15, %v2695_v37  ;;  %v2039_v20 = vperm.slane %v2031_v10, %v2695_v37  ;;  %v2110_v46 = vsub.f32 1.0, %v2109_v44 }
 0x72d   : > { %v2017_v9 = vsel %vm539_vm1, %v2016_v16, %v1998_v63  ;;  %v2029_v6 = vsel %vm539_vm1, %v2028_v18, %v2009_v61  ;;  %v2397_v18 = vld [vmem:[%s3012_s10] sm:$0xff] }
 0x72e   : > { %v2046_v21 = vrot.slane %v2027_v11, 4  ;;  %v2044_v22 = vrot.slane %v2039_v20, 4  ;;  %v2023_v8 = vperm.slane %v2017_v9, %v2695_v37  ;;  %v2035_v23 = vperm.slane %v2029_v6, %v2695_v37  ;;  %v2394_v37 = vld [vmem:[%s3006_s4 + $0x8] sm:$0xff]  ;;  %2227 = vmatpush.bf16.msra.mxu0 %v2398_v62 }
 0x72f   : > { %2095 = vmatpush.bf16.msra.mxu2 %v2394_v37  ;;  %v2111_v47 = vmul.f32 %v2530_v43, %v2110_v46 }
 0x730   : > { %v2047_v24 = vsel %vm539_vm1, %v2039_v20, %v2046_v21  ;;  %v2045_v25 = vsel %vm539_vm1, %v2044_v22, %v2027_v11  ;;  %v2040_v26 = vrot.slane %v2035_v23, 4  ;;  %v2042_v27 = vrot.slane %v2023_v8, 4  ;;  %v2509_v11 = vld [vmem:[%s3011_s9] ss:$0 sm:$0xff] }
 0x731   : > { %2057 = vrot.lane.b32.xlu1 %v2047_v24, %s2552_s22  ;;  %2053 = vrot.lane.b32.xlu0 %v2045_v25, %s2553_s23  ;;  %v2112_v48 = vadd.f32 %v2530_v43, %v2111_v47 }
 0x732   : > { %v2043_v28 = vsel %vm539_vm1, %v2035_v23, %v2042_v27  ;;  %v2041_v12 = vsel %vm539_vm1, %v2040_v26, %v2023_v8  ;;  %2228 = vmatpush.bf16.msra.mxu0 %v2397_v18  ;;  %v2510_v8 = vld [vmem:[%s3013_s11] ss:$0 sm:$0xff] }
 0x733   : > { %2049 = vrot.lane.b32.xlu2 %v2043_v28, %s2554_s24  ;;  %2096 = vmatpush.bf16.msra.mxu2 %v2393_v29  ;;  %v2114_v49 = vsel %vm2113_vm7, %v2530_v43, %v2112_v48 }
 0x78d   : > { %v2050_v31 = vpop.permute.xlu2 %2049 }
 0x78e   : > { %v2060_v32 = vsel %vm1204_vm3, %v2041_v12, %v2050_v31 }
 0x7a3   : > { %v2058_v17 = vpop.permute.xlu1 %2057  ;;  %v2054_v33 = vpop.permute.xlu0 %2053 }
 0x7a4   : > { %v2062_v34 = vsel %vm2061_vm5, %v2060_v32, %v2054_v33 }
 0x7a5   : > { %v2064_v35 = vsel %vm2063_vm6, %v2062_v34, %v2058_v17 }
 0x7a6   : > { %v2065_v36 = vpack.c.bf16 %v2064_v35, %v2064_v35 }
 0x7a8   : > { %2362 = vmatmul.msk.bf16.vlgmr.msra.gmra.mxu2 %vm511_vm0, %v2065_v36 }
 0x82b   : > { %v2098_v38 = vpop.f32.mrf.mxu2 }
 0x82c   : > { %v2099_v39 = vadd.f32 %v2506_v19, %v2098_v38 }
 0x82e   : > { %v2102_v41 = vadd.f32 %v2535_v40, %v2099_v39  ;;  %v2511_v40 = vld [vmem:[%s3014_s12] ss:$0 sm:$0xff] }
 0x830   : > { %v2105_v45 = vsel %vm511_vm0, %v2102_v41, 0.0 }
 0x831   : > { %2106 = vadd.xlane.f32.xlu1 %v2105_v45  ;;  %v2512_v45 = vld [vmem:[%s3015_s13] ss:$0 sm:$0xff] }
 0x833   : > { %v2100_v2 = vpop.f32.mrf.mxu2 }
 0x8a4   : > { %v2107_v50 = vpop.xlane.xlu1 %2106 }
 0x8a5   : > { %v2115_v51 = vmul.f32 %v2114_v49, %v2107_v50 }
 0x8a7   : > { %v2116_v52 = vsub.f32 %v2102_v41, %v2115_v51 }
 0x8a9   : > { %v2117_v53 = vmul.f32 %v2116_v52, %v2116_v52 }
 0x8ab   : > { %v2118_v54 = vsel %vm511_vm0, %v2117_v53, 0.0 }
 0x8ac   : > { %2119 = vadd.xlane.f32.xlu2 %v2118_v54 }
 0x91f   : > { %v2120_v58 = vpop.xlane.xlu2 %2119 }
 0x920   : > { %v2121_v59 = vmul.f32 %v2120_v58, %v2114_v49 }
 0x922   : > { %v2122_v61 = vadd.f32 1e-05, %v2121_v59 }
 0x924   : > { %2531 = vrsqrt.f32 %v2122_v61  ;;  %vm2129_vm9 = vweird.f32 %v2122_v61 }
 0x92a   : > { %v2532_v63 = vpop.eup %2531 }
 0x92b   : > { %v2124_v0 = vmul.f32 %v2532_v63, %v2122_v61  ;;  %vm2130_vm8 = vweird.f32 %v2532_v63 }
 0x92c   : > { %vm2131_vm10 = vmor %vm2129_vm9, %vm2130_vm8 }
 0x92d   : > { %v2125_v1 = vmul.f32 %v2532_v63, %v2124_v0 }
 0x92f   : > { %v2126_v3 = vmul.f32 0.5, %v2125_v1 }
 0x931   : > { %v2127_v4 = vsub.f32 1.5, %v2126_v3 }
 0x933   : > { %v2128_v30 = vmul.f32 %v2532_v63, %v2127_v4 }
 0x935   : > { %v2132_v7 = vsel %vm2131_vm10, %v2532_v63, %v2128_v30 }
 0x936   : > { %v2133_v14 = vmul.f32 %v2132_v7, %v2116_v52 }
 0x938   : > { %v2137_v15 = vmul.f32 %v2507_v5, %v2133_v14 }
 0x93a   : > { %v2141_v10 = vadd.f32 %v2508_v13, %v2137_v15 }
 0x93c   : > { %v2142_v16 = vpack.c.bf16 %v2141_v10, %v2141_v10 }
 0x93e   : > { %2371 = vmatmul.msk.bf16.vlgmr.msra.gmra.mxu3 %vm511_vm0, %v2142_v16 }
 0x9c1   : > { %v2175_v20 = vpop.f32.mrf.mxu3 }
 0x9c2   : > { %v2176_v9 = vadd.f32 %v2509_v11, %v2175_v20 }
 0x9c4   : > { %v2179_v6 = vmax.f32 %v2176_v9, 0.0 }
 0x9c6   : > { %v2180_v21 = vpack.c.bf16 %v2179_v6, %v2179_v6 }
 0x9c8   : > { %2388 = vmatmul.msk.bf16.vlgmr.msra.gmra.mxu0 %vm2217_vm11, %v2180_v21 }
 0x9c9   : > { %v2177_v22 = vpop.f32.mrf.mxu3 }
 0xa45   : > { %v2230_v23 = vpop.f32.mrf.mxu0 }
 0xa46   : > { %v2231_v24 = vadd.f32 %v2510_v8, %v2230_v23 }
 0xa48   : > { %v2234_v25 = vadd.f32 %v2231_v24, %v2141_v10 }
 0xa4a   : > { %v2237_v26 = vsel %vm511_vm0, %v2234_v25, 0.0 }
 0xa4b   : > { %2238 = vadd.xlane.f32.xlu0 %v2237_v26 }
 0xa4d   : > { %v2232_v27 = vpop.f32.mrf.mxu0 }
 0xabe   : > { %v2239_v28 = vpop.xlane.xlu0 %2238 }
 0xabf   : > { %v2240_v12 = vmul.f32 %v2239_v28, %v2114_v49 }
 0xac1   : > { %v2241_v37 = vsub.f32 %v2234_v25, %v2240_v12 }
 0xac3   : > { %v2242_v29 = vmul.f32 %v2241_v37, %v2241_v37 }
 0xac5   : > { %v2243_v31 = vsel %vm511_vm0, %v2242_v29, 0.0 }
 0xac6   : > { %2244 = vadd.xlane.f32.xlu1 %v2243_v31 }
 0xb39   : > { %v2245_v32 = vpop.xlane.xlu1 %2244 }
 0xb3a   : > { %v2246_v17 = vmul.f32 %v2245_v32, %v2114_v49 }
 0xb3c   : > { %v2247_v33 = vadd.f32 1e-05, %v2246_v17 }
 0xb3e   : > { %2533 = vrsqrt.f32 %v2247_v33  ;;  %vm2254_vm13 = vweird.f32 %v2247_v33 }
 0xb44   : > { %v2534_v34 = vpop.eup %2533 }
 0xb45   : > { %v2249_v35 = vmul.f32 %v2534_v34, %v2247_v33  ;;  %vm2255_vm12 = vweird.f32 %v2534_v34 }
 0xb46   : > { %vm2256_vm14 = vmor %vm2254_vm13, %vm2255_vm12 }
 0xb47   : > { %v2250_v36 = vmul.f32 %v2534_v34, %v2249_v35 }
 0xb49   : > { %v2251_v19 = vmul.f32 0.5, %v2250_v36 }
 0xb4b   : > { %v2252_v38 = vsub.f32 1.5, %v2251_v19 }
 0xb4d   : > { %v2253_v39 = vmul.f32 %v2534_v34, %v2252_v38 }
 0xb4f   : > { %v2257_v41 = vsel %vm2256_vm14, %v2534_v34, %v2253_v39 }
 0xb50   : > { %v2258_v2 = vmul.f32 %v2257_v41, %v2241_v37 }
 0xb52   : > { %v2262_v42 = vmul.f32 %v2511_v40, %v2258_v2 }
 0xb54   : > { %v2266_v43 = vadd.f32 %v2512_v45, %v2262_v42 }
 0xb56   : > { %2267 = vst.msk [vmem:[%s476_s25] sm:$0xff] %vm511_vm0, %v2266_v43 }
 0xb57 PF: > { %s24_s29 = sadd.s32 1, %s2542_s29  }
 0xb58   : > { %p21_p4 = scmp.ge.s32.totalorder %s24_s29, 4  }
 0xb5a   :  { %23 = sbr.rel (!%p21_p4) target bundleno = 1 (0x1), region = 109 }

</bundles_post_ra>
